<compile_context>
chip_gen: v5e
topology: v5e:2x2
jax: 0.10.0
libtpu: 0.0.40
codegen_flags: <defaults>
</compile_context>

<pallas_src>
import functools

import jax
import jax.numpy as jnp
import numpy as np
from jax.experimental import pallas as pl
from jax.experimental.pallas import tpu as pltpu


def _round_up(x, m):
    return ((x + m - 1) // m) * m


def _caption_decoder_kernel(x_ref, wx_ref, wh_ref, b_ref, wf_ref, bf_ref,
                            perm_ref, out_ref, gx_ref, h_all_ref,
                            *, seq_len, batch_pad, hidden_pad):
    """Fused: batched input projection -> LSTM recurrence -> batched FC."""
    T, Bp, Hp = seq_len, batch_pad, hidden_pad

    # ---- Phase 1: input projection for ALL time steps, one MXU matmul ----
    # x: (T*Bp, E) bf16, Wx: (E, 4Hp) bf16 -> gates_x: (T*Bp, 4Hp) f32 (+ bias)
    gx_ref[...] = (jnp.dot(x_ref[...], wx_ref[...],
                           preferred_element_type=jnp.float32)
                   + b_ref[...])

    # ---- Phase 2: recurrence; only h @ Wh is on the serial path ----------
    wh = wh_ref[...]                                   # (Hp, 4Hp) bf16, hoisted

    def step(t, carry):
        h, c = carry                                   # (Bp, Hp) f32 carries
        row = pl.multiple_of(t * Bp, Bp)
        gates = gx_ref[pl.ds(row, Bp), :] + jnp.dot(
            h.astype(jnp.bfloat16), wh, preferred_element_type=jnp.float32)
        # PyTorch gate order [i, f, g, o]; Hp=128-aligned slices -> full-vreg VPU/EUP work.
        i_g = jax.nn.sigmoid(gates[:, 0 * Hp:1 * Hp])
        f_g = jax.nn.sigmoid(gates[:, 1 * Hp:2 * Hp])
        g_g = jnp.tanh(gates[:, 2 * Hp:3 * Hp])
        o_g = jax.nn.sigmoid(gates[:, 3 * Hp:4 * Hp])
        c_new = f_g * c + i_g * g_g
        h_new = o_g * jnp.tanh(c_new)
        h_all_ref[pl.ds(row, Bp), :] = h_new           # time-major h slab (dense store)
        return h_new, c_new

    init = (jnp.zeros((Bp, Hp), jnp.float32), jnp.zeros((Bp, Hp), jnp.float32))
    jax.lax.fori_loop(0, T, step, init, unroll=True)

    # ---- Phase 3: batch-first reorder + ONE batched FC matmul ------------
    # Exact 0/1 permutation (time-major row t*Bp+b -> batch-major row b*T+t),
    # done on-chip via the MXU so no HBM transpose is needed downstream.
    h_bm = jnp.dot(perm_ref[...], h_all_ref[...],
                   preferred_element_type=jnp.float32)        # (Bp*T, Hp) f32
    logits = (jnp.dot(h_bm.astype(jnp.bfloat16), wf_ref[...],
                      preferred_element_type=jnp.float32)
              + bf_ref[...])                                  # (Bp*T, Vp) f32
    out_ref[...] = logits.astype(out_ref.dtype)               # lane-dense, batch-first


def caption_decoder_forward(image_features, captions, params):
    """JAX/Pallas equivalent of CaptionDecoder.forward.

    image_features: (B, E) float32
    captions      : (B, S) int32
    returns       : (B, S, V) float32
    """
    emb_table = params["embedding"]          # (V, E)
    w_ih = params["w_ih"]                    # (4H, E)   PyTorch layout [i,f,g,o]
    w_hh = params["w_hh"]                    # (4H, H)
    b_ih = params["b_ih"]                    # (4H,)
    b_hh = params["b_hh"]                    # (4H,)
    w_fc = params["w_fc"]                    # (V, H)
    b_fc = params["b_fc"]                    # (V,)

    B, E = image_features.shape
    H = w_hh.shape[1]
    V = w_fc.shape[0]
    S = captions.shape[1]
    T = S                                     # drop last token, prepend image feature

    Bp = _round_up(B, 8)                      # sublane-dense batch
    Hp = _round_up(H, 128)                    # 128-lane-aligned gate slices
    Vp = _round_up(V, 128)                    # lane-dense logits store

    # ---- glue (plain JAX): embedding lookup + concat, built time-major ----
    tok_t = jnp.transpose(captions[:, :-1])                       # (T-1, B)
    emb_t = jnp.take(emb_table, tok_t, axis=0)                    # (T-1, B, E)
    x_tbe = jnp.concatenate(
        [image_features[None].astype(emb_t.dtype), emb_t], axis=0)  # (T, B, E)
    x_tbe = jnp.pad(x_tbe, ((0, 0), (0, Bp - B), (0, 0)))
    x2d = x_tbe.reshape(T * Bp, E).astype(jnp.bfloat16)           # time-major rows t*Bp+b

    # ---- weight prep: per-gate zero-padding of H -> Hp, bf16 for the MXU ----
    def pad_gate_cols(w_t):   # (in_dim, 4H) -> (in_dim, 4Hp)
        n = w_t.shape[0]
        return jnp.pad(w_t.reshape(n, 4, H),
                       ((0, 0), (0, 0), (0, Hp - H))).reshape(n, 4 * Hp)

    wx = pad_gate_cols(w_ih.T).astype(jnp.bfloat16)                           # (E, 4Hp)
    wh = jnp.pad(pad_gate_cols(w_hh.T),
                 ((0, Hp - H), (0, 0))).astype(jnp.bfloat16)                  # (Hp, 4Hp)
    bias = jnp.pad((b_ih + b_hh).reshape(4, H),
                   ((0, 0), (0, Hp - H))).reshape(1, 4 * Hp).astype(jnp.float32)
    wf = jnp.pad(w_fc.T, ((0, Hp - H), (0, Vp - V))).astype(jnp.bfloat16)     # (Hp, Vp)
    bfc = jnp.pad(b_fc, (0, Vp - V)).reshape(1, Vp).astype(jnp.float32)       # (1, Vp)

    # Static 0/1 permutation: batch-major row r=b*T+t picks time-major row t*Bp+b.
    rows = np.arange(Bp * T)
    perm_np = np.zeros((Bp * T, T * Bp), np.float32)
    perm_np[rows, (rows % T) * Bp + rows // T] = 1.0
    perm = jnp.asarray(perm_np)

    kernel = functools.partial(_caption_decoder_kernel,
                               seq_len=T, batch_pad=Bp, hidden_pad=Hp)

    out2d = pl.pallas_call(
        kernel,
        out_shape=jax.ShapeDtypeStruct((Bp * T, Vp), jnp.float32),
        grid_spec=pltpu.PrefetchScalarGridSpec(
            num_scalar_prefetch=0,
            grid=(1,),                                   # time grid collapsed
            in_specs=[
                pl.BlockSpec((T * Bp, E), lambda i: (0, 0)),       # x (time-major)
                pl.BlockSpec((E, 4 * Hp), lambda i: (0, 0)),       # Wx
                pl.BlockSpec((Hp, 4 * Hp), lambda i: (0, 0)),      # Wh
                pl.BlockSpec((1, 4 * Hp), lambda i: (0, 0)),       # fused bias
                pl.BlockSpec((Hp, Vp), lambda i: (0, 0)),          # W_fc
                pl.BlockSpec((1, Vp), lambda i: (0, 0)),           # b_fc
                pl.BlockSpec((Bp * T, T * Bp), lambda i: (0, 0)),  # permutation
            ],
            out_specs=pl.BlockSpec((Bp * T, Vp), lambda i: (0, 0)),
            scratch_shapes=[
                pltpu.VMEM((T * Bp, 4 * Hp), jnp.float32),   # gates_x (phase 1 result)
                pltpu.VMEM((T * Bp, Hp), jnp.float32),       # all hidden states
            ],
        ),
        compiler_params=pltpu.CompilerParams(
            dimension_semantics=("arbitrary",),
            vmem_limit_bytes=64 * 1024 * 1024,   # explicit budget (v7x: 64 MiB VMEM)
        ),
    )(x2d, wx, wh, bias, wf, bfc, perm)

    # Free reshape + slice off padding; no HBM transpose (already batch-first).
    return out2d.reshape(Bp, T, Vp)[:B, :, :V]


def _reference_forward(image_features, captions, params):
    """Pure-JAX f32 reference (lax.scan LSTM) for correctness check."""
    emb = jnp.take(params["embedding"], captions[:, :-1], axis=0)
    x = jnp.concatenate([image_features[:, None, :], emb], axis=1)
    B = x.shape[0]
    H = params["w_hh"].shape[1]
    wx = params["w_ih"].T
    wh = params["w_hh"].T
    b = params["b_ih"] + params["b_hh"]

    def step(carry, x_t):
        h, c = carry
        g = x_t @ wx + h @ wh + b
        i = jax.nn.sigmoid(g[:, 0 * H:1 * H])
        f = jax.nn.sigmoid(g[:, 1 * H:2 * H])
        gg = jnp.tanh(g[:, 2 * H:3 * H])
        o = jax.nn.sigmoid(g[:, 3 * H:4 * H])
        c = f * c + i * gg
        h = o * jnp.tanh(c)
        return (h, c), h

    init = (jnp.zeros((B, H), jnp.float32), jnp.zeros((B, H), jnp.float32))
    _, hs = jax.lax.scan(step, init, jnp.transpose(x, (1, 0, 2)))
    hs = jnp.transpose(hs, (1, 0, 2))                       # (B, T, H)
    return hs @ params["w_fc"].T + params["b_fc"]


if __name__ == "__main__":
    batch_size = 2
    embedding_dim = 32
    hidden_dim = 32
    vocab_size = 64
    seq_len = 8          # captions length; T = (seq_len - 1) + 1 = seq_len

    key = jax.random.PRNGKey(0)
    keys = jax.random.split(key, 10)

    params = {
        "embedding": 0.1 * jax.random.normal(keys[0], (vocab_size, embedding_dim), jnp.float32),
        "w_ih": 0.1 * jax.random.normal(keys[1], (4 * hidden_dim, embedding_dim), jnp.float32),
        "w_hh": 0.1 * jax.random.normal(keys[2], (4 * hidden_dim, hidden_dim), jnp.float32),
        "b_ih": 0.1 * jax.random.normal(keys[3], (4 * hidden_dim,), jnp.float32),
        "b_hh": 0.1 * jax.random.normal(keys[4], (4 * hidden_dim,), jnp.float32),
        "w_fc": 0.1 * jax.random.normal(keys[5], (vocab_size, hidden_dim), jnp.float32),
        "b_fc": 0.1 * jax.random.normal(keys[6], (vocab_size,), jnp.float32),
    }

    image_features = jax.random.normal(keys[7], (batch_size, embedding_dim), jnp.float32)
    captions = jax.random.randint(keys[8], (batch_size, seq_len), 0, vocab_size, jnp.int32)

    out = caption_decoder_forward(image_features, captions, params)
    out = jax.block_until_ready(out)
    assert out.shape == (batch_size, seq_len, vocab_size), out.shape

    ref = jax.block_until_ready(_reference_forward(image_features, captions, params))
    # bf16 MXU inputs with f32 accumulation -> compare at bf16-appropriate tolerance.
    np.testing.assert_allclose(np.asarray(out), np.asarray(ref), rtol=2e-2, atol=2e-2)

    print("KERNEL_OK")
</pallas_src>

<mosaic_0001>
module attributes {stable_mosaic.version = 11 : i64} {
  func.func @_caption_decoder_kernel(%arg0: i32, %arg1: memref<64x32xbf16, #tpu.memory_space<vmem>>, %arg2: memref<32x512xbf16, #tpu.memory_space<vmem>>, %arg3: memref<128x512xbf16, #tpu.memory_space<vmem>>, %arg4: memref<1x512xf32, #tpu.memory_space<vmem>>, %arg5: memref<128x128xbf16, #tpu.memory_space<vmem>>, %arg6: memref<1x128xf32, #tpu.memory_space<vmem>>, %arg7: memref<64x64xf32, #tpu.memory_space<vmem>>, %arg8: memref<64x128xf32, #tpu.memory_space<vmem>>, %arg9: memref<64x512xf32, #tpu.memory_space<vmem>>, %arg10: memref<64x128xf32, #tpu.memory_space<vmem>>) attributes {dimension_semantics = [#tpu.dimension_semantics<arbitrary>], iteration_bounds = array<i64: 1>, scalar_prefetch = 0 : i64, scratch_operands = 2 : i64, tpu.core_type = #tpu.core_type<tc>, window_params = [{pipeline_mode = #tpu.pipeline_mode<synchronous>, transform_indices = @transform_0, window_bounds = array<i64: 64, 32>}, {pipeline_mode = #tpu.pipeline_mode<synchronous>, transform_indices = @transform_1, window_bounds = array<i64: 32, 512>}, {pipeline_mode = #tpu.pipeline_mode<synchronous>, transform_indices = @transform_2, window_bounds = array<i64: 128, 512>}, {pipeline_mode = #tpu.pipeline_mode<synchronous>, transform_indices = @transform_3, window_bounds = array<i64: 1, 512>}, {pipeline_mode = #tpu.pipeline_mode<synchronous>, transform_indices = @transform_4, window_bounds = array<i64: 128, 128>}, {pipeline_mode = #tpu.pipeline_mode<synchronous>, transform_indices = @transform_5, window_bounds = array<i64: 1, 128>}, {pipeline_mode = #tpu.pipeline_mode<synchronous>, transform_indices = @transform_6, window_bounds = array<i64: 64, 64>}, {pipeline_mode = #tpu.pipeline_mode<synchronous>, transform_indices = @transform_7, window_bounds = array<i64: 64, 128>}]} {
    %c0 = arith.constant 0 : index
    %c0_0 = arith.constant 0 : index
    %0 = vector.load %arg1[%c0, %c0_0] : memref<64x32xbf16, #tpu.memory_space<vmem>>, vector<64x32xbf16>
    %c0_1 = arith.constant 0 : index
    %c0_2 = arith.constant 0 : index
    %1 = vector.load %arg2[%c0_1, %c0_2] : memref<32x512xbf16, #tpu.memory_space<vmem>>, vector<32x512xbf16>
    %cst = arith.constant dense<0.000000e+00> : vector<64x512xf32>
    %2 = tpu.matmul %0, %1, %cst {dimension_numbers = #tpu.dot_dimension_numbers<[1], [0], [0], [1], [0, 0, 1, 1], [], []>} : vector<64x32xbf16>, vector<32x512xbf16>, vector<64x512xf32> -> vector<64x512xf32>
    %c0_3 = arith.constant 0 : index
    %c0_4 = arith.constant 0 : index
    %3 = vector.load %arg4[%c0_3, %c0_4] : memref<1x512xf32, #tpu.memory_space<vmem>>, vector<1x512xf32>
    %4 = vector.broadcast %3 : vector<1x512xf32> to vector<64x512xf32>
    %5 = arith.addf %2, %4 : vector<64x512xf32>
    %c0_5 = arith.constant 0 : index
    %c0_6 = arith.constant 0 : index
    %6 = vector.load %arg9[%c0_5, %c0_6] : memref<64x512xf32, #tpu.memory_space<vmem>>, vector<64x512xf32>
    tpu.vector_store %arg9[%c0_5, %c0_6], %5 {strides = array<i32>} : memref<64x512xf32, #tpu.memory_space<vmem>>, vector<64x512xf32>,
    %c0_7 = arith.constant 0 : index
    %c0_8 = arith.constant 0 : index
    %7 = vector.load %arg3[%c0_7, %c0_8] : memref<128x512xbf16, #tpu.memory_space<vmem>>, vector<128x512xbf16>
    %cst_9 = arith.constant 0.000000e+00 : f32
    %8 = vector.broadcast %cst_9 : f32 to vector<8x128xf32>
    %cst_10 = arith.constant 0.000000e+00 : f32
    %9 = vector.broadcast %cst_10 : f32 to vector<8x128xf32>
    %c0_i32 = arith.constant 0 : i32
    %c8_i32 = arith.constant 8 : i32
    %10 = arith.muli %c0_i32, %c8_i32 : i32
    %11 = tpu.assume_multiple %10, 8 : i32
    %12 = arith.index_cast %11 : i32 to index
    %c0_11 = arith.constant 0 : index
    %13 = vector.load %arg9[%12, %c0_11] : memref<64x512xf32, #tpu.memory_space<vmem>>, vector<8x512xf32>
    %14 = arith.truncf %8 : vector<8x128xf32> to vector<8x128xbf16>
    %cst_12 = arith.constant dense<0.000000e+00> : vector<8x512xf32>
    %15 = tpu.matmul %14, %7, %cst_12 {dimension_numbers = #tpu.dot_dimension_numbers<[1], [0], [0], [1], [0, 0, 1, 1], [], []>} : vector<8x128xbf16>, vector<128x512xbf16>, vector<8x512xf32> -> vector<8x512xf32>
    %16 = arith.addf %13, %15 : vector<8x512xf32>
    %17 = vector.extract_strided_slice %16 {offsets = [0, 0], sizes = [8, 128], strides = [1, 1]} : vector<8x512xf32> to vector<8x128xf32>
    %18 = arith.negf %17 : vector<8x128xf32>
    %19 = math.exp %18 : vector<8x128xf32>
    %cst_13 = arith.constant 1.000000e+00 : f32
    %20 = vector.broadcast %cst_13 : f32 to vector<8x128xf32>
    %21 = arith.addf %20, %19 : vector<8x128xf32>
    %22 = arith.divf %20, %21 : vector<8x128xf32>
    %23 = vector.extract_strided_slice %16 {offsets = [0, 128], sizes = [8, 128], strides = [1, 1]} : vector<8x512xf32> to vector<8x128xf32>
    %24 = arith.negf %23 : vector<8x128xf32>
    %25 = math.exp %24 : vector<8x128xf32>
    %cst_14 = arith.constant 1.000000e+00 : f32
    %26 = vector.broadcast %cst_14 : f32 to vector<8x128xf32>
    %27 = arith.addf %26, %25 : vector<8x128xf32>
    %28 = arith.divf %26, %27 : vector<8x128xf32>
    %29 = vector.extract_strided_slice %16 {offsets = [0, 256], sizes = [8, 128], strides = [1, 1]} : vector<8x512xf32> to vector<8x128xf32>
    %30 = math.tanh %29 : vector<8x128xf32>
    %31 = vector.extract_strided_slice %16 {offsets = [0, 384], sizes = [8, 128], strides = [1, 1]} : vector<8x512xf32> to vector<8x128xf32>
    %32 = arith.negf %31 : vector<8x128xf32>
    %33 = math.exp %32 : vector<8x128xf32>
    %cst_15 = arith.constant 1.000000e+00 : f32
    %34 = vector.broadcast %cst_15 : f32 to vector<8x128xf32>
    %35 = arith.addf %34, %33 : vector<8x128xf32>
    %36 = arith.divf %34, %35 : vector<8x128xf32>
    %37 = arith.mulf %28, %9 : vector<8x128xf32>
    %38 = arith.mulf %22, %30 : vector<8x128xf32>
    %39 = arith.addf %37, %38 : vector<8x128xf32>
    %40 = math.tanh %39 : vector<8x128xf32>
    %41 = arith.mulf %36, %40 : vector<8x128xf32>
    %42 = arith.index_cast %11 : i32 to index
    %c0_16 = arith.constant 0 : index
    %43 = vector.load %arg10[%42, %c0_16] : memref<64x128xf32, #tpu.memory_space<vmem>>, vector<8x128xf32>
    tpu.vector_store %arg10[%42, %c0_16], %41 {strides = array<i32>} : memref<64x128xf32, #tpu.memory_space<vmem>>, vector<8x128xf32>,
    %c1_i32 = arith.constant 1 : i32
    %c8_i32_17 = arith.constant 8 : i32
    %44 = arith.muli %c1_i32, %c8_i32_17 : i32
    %45 = tpu.assume_multiple %44, 8 : i32
    %46 = arith.index_cast %45 : i32 to index
    %c0_18 = arith.constant 0 : index
    %47 = vector.load %arg9[%46, %c0_18] : memref<64x512xf32, #tpu.memory_space<vmem>>, vector<8x512xf32>
    %48 = arith.truncf %41 : vector<8x128xf32> to vector<8x128xbf16>
    %cst_19 = arith.constant dense<0.000000e+00> : vector<8x512xf32>
    %49 = tpu.matmul %48, %7, %cst_19 {dimension_numbers = #tpu.dot_dimension_numbers<[1], [0], [0], [1], [0, 0, 1, 1], [], []>} : vector<8x128xbf16>, vector<128x512xbf16>, vector<8x512xf32> -> vector<8x512xf32>
    %50 = arith.addf %47, %49 : vector<8x512xf32>
    %51 = vector.extract_strided_slice %50 {offsets = [0, 0], sizes = [8, 128], strides = [1, 1]} : vector<8x512xf32> to vector<8x128xf32>
    %52 = arith.negf %51 : vector<8x128xf32>
    %53 = math.exp %52 : vector<8x128xf32>
    %cst_20 = arith.constant 1.000000e+00 : f32
    %54 = vector.broadcast %cst_20 : f32 to vector<8x128xf32>
    %55 = arith.addf %54, %53 : vector<8x128xf32>
    %56 = arith.divf %54, %55 : vector<8x128xf32>
    %57 = vector.extract_strided_slice %50 {offsets = [0, 128], sizes = [8, 128], strides = [1, 1]} : vector<8x512xf32> to vector<8x128xf32>
    %58 = arith.negf %57 : vector<8x128xf32>
    %59 = math.exp %58 : vector<8x128xf32>
    %cst_21 = arith.constant 1.000000e+00 : f32
    %60 = vector.broadcast %cst_21 : f32 to vector<8x128xf32>
    %61 = arith.addf %60, %59 : vector<8x128xf32>
    %62 = arith.divf %60, %61 : vector<8x128xf32>
    %63 = vector.extract_strided_slice %50 {offsets = [0, 256], sizes = [8, 128], strides = [1, 1]} : vector<8x512xf32> to vector<8x128xf32>
    %64 = math.tanh %63 : vector<8x128xf32>
    %65 = vector.extract_strided_slice %50 {offsets = [0, 384], sizes = [8, 128], strides = [1, 1]} : vector<8x512xf32> to vector<8x128xf32>
    %66 = arith.negf %65 : vector<8x128xf32>
    %67 = math.exp %66 : vector<8x128xf32>
    %cst_22 = arith.constant 1.000000e+00 : f32
    %68 = vector.broadcast %cst_22 : f32 to vector<8x128xf32>
    %69 = arith.addf %68, %67 : vector<8x128xf32>
    %70 = arith.divf %68, %69 : vector<8x128xf32>
    %71 = arith.mulf %62, %39 : vector<8x128xf32>
    %72 = arith.mulf %56, %64 : vector<8x128xf32>
    %73 = arith.addf %71, %72 : vector<8x128xf32>
    %74 = math.tanh %73 : vector<8x128xf32>
    %75 = arith.mulf %70, %74 : vector<8x128xf32>
    %76 = arith.index_cast %45 : i32 to index
    %c0_23 = arith.constant 0 : index
    %77 = vector.load %arg10[%76, %c0_23] : memref<64x128xf32, #tpu.memory_space<vmem>>, vector<8x128xf32>
    tpu.vector_store %arg10[%76, %c0_23], %75 {strides = array<i32>} : memref<64x128xf32, #tpu.memory_space<vmem>>, vector<8x128xf32>,
    %c2_i32 = arith.constant 2 : i32
    %c8_i32_24 = arith.constant 8 : i32
    %78 = arith.muli %c2_i32, %c8_i32_24 : i32
    %79 = tpu.assume_multiple %78, 8 : i32
    %80 = arith.index_cast %79 : i32 to index
    %c0_25 = arith.constant 0 : index
    %81 = vector.load %arg9[%80, %c0_25] : memref<64x512xf32, #tpu.memory_space<vmem>>, vector<8x512xf32>
    %82 = arith.truncf %75 : vector<8x128xf32> to vector<8x128xbf16>
    %cst_26 = arith.constant dense<0.000000e+00> : vector<8x512xf32>
    %83 = tpu.matmul %82, %7, %cst_26 {dimension_numbers = #tpu.dot_dimension_numbers<[1], [0], [0], [1], [0, 0, 1, 1], [], []>} : vector<8x128xbf16>, vector<128x512xbf16>, vector<8x512xf32> -> vector<8x512xf32>
    %84 = arith.addf %81, %83 : vector<8x512xf32>
    %85 = vector.extract_strided_slice %84 {offsets = [0, 0], sizes = [8, 128], strides = [1, 1]} : vector<8x512xf32> to vector<8x128xf32>
    %86 = arith.negf %85 : vector<8x128xf32>
    %87 = math.exp %86 : vector<8x128xf32>
    %cst_27 = arith.constant 1.000000e+00 : f32
    %88 = vector.broadcast %cst_27 : f32 to vector<8x128xf32>
    %89 = arith.addf %88, %87 : vector<8x128xf32>
    %90 = arith.divf %88, %89 : vector<8x128xf32>
    %91 = vector.extract_strided_slice %84 {offsets = [0, 128], sizes = [8, 128], strides = [1, 1]} : vector<8x512xf32> to vector<8x128xf32>
    %92 = arith.negf %91 : vector<8x128xf32>
    %93 = math.exp %92 : vector<8x128xf32>
    %cst_28 = arith.constant 1.000000e+00 : f32
    %94 = vector.broadcast %cst_28 : f32 to vector<8x128xf32>
    %95 = arith.addf %94, %93 : vector<8x128xf32>
    %96 = arith.divf %94, %95 : vector<8x128xf32>
    %97 = vector.extract_strided_slice %84 {offsets = [0, 256], sizes = [8, 128], strides = [1, 1]} : vector<8x512xf32> to vector<8x128xf32>
    %98 = math.tanh %97 : vector<8x128xf32>
    %99 = vector.extract_strided_slice %84 {offsets = [0, 384], sizes = [8, 128], strides = [1, 1]} : vector<8x512xf32> to vector<8x128xf32>
    %100 = arith.negf %99 : vector<8x128xf32>
    %101 = math.exp %100 : vector<8x128xf32>
    %cst_29 = arith.constant 1.000000e+00 : f32
    %102 = vector.broadcast %cst_29 : f32 to vector<8x128xf32>
    %103 = arith.addf %102, %101 : vector<8x128xf32>
    %104 = arith.divf %102, %103 : vector<8x128xf32>
    %105 = arith.mulf %96, %73 : vector<8x128xf32>
    %106 = arith.mulf %90, %98 : vector<8x128xf32>
    %107 = arith.addf %105, %106 : vector<8x128xf32>
    %108 = math.tanh %107 : vector<8x128xf32>
    %109 = arith.mulf %104, %108 : vector<8x128xf32>
    %110 = arith.index_cast %79 : i32 to index
    %c0_30 = arith.constant 0 : index
    %111 = vector.load %arg10[%110, %c0_30] : memref<64x128xf32, #tpu.memory_space<vmem>>, vector<8x128xf32>
    tpu.vector_store %arg10[%110, %c0_30], %109 {strides = array<i32>} : memref<64x128xf32, #tpu.memory_space<vmem>>, vector<8x128xf32>,
    %c3_i32 = arith.constant 3 : i32
    %c8_i32_31 = arith.constant 8 : i32
    %112 = arith.muli %c3_i32, %c8_i32_31 : i32
    %113 = tpu.assume_multiple %112, 8 : i32
    %114 = arith.index_cast %113 : i32 to index
    %c0_32 = arith.constant 0 : index
    %115 = vector.load %arg9[%114, %c0_32] : memref<64x512xf32, #tpu.memory_space<vmem>>, vector<8x512xf32>
    %116 = arith.truncf %109 : vector<8x128xf32> to vector<8x128xbf16>
    %cst_33 = arith.constant dense<0.000000e+00> : vector<8x512xf32>
    %117 = tpu.matmul %116, %7, %cst_33 {dimension_numbers = #tpu.dot_dimension_numbers<[1], [0], [0], [1], [0, 0, 1, 1], [], []>} : vector<8x128xbf16>, vector<128x512xbf16>, vector<8x512xf32> -> vector<8x512xf32>
    %118 = arith.addf %115, %117 : vector<8x512xf32>
    %119 = vector.extract_strided_slice %118 {offsets = [0, 0], sizes = [8, 128], strides = [1, 1]} : vector<8x512xf32> to vector<8x128xf32>
    %120 = arith.negf %119 : vector<8x128xf32>
    %121 = math.exp %120 : vector<8x128xf32>
    %cst_34 = arith.constant 1.000000e+00 : f32
    %122 = vector.broadcast %cst_34 : f32 to vector<8x128xf32>
    %123 = arith.addf %122, %121 : vector<8x128xf32>
    %124 = arith.divf %122, %123 : vector<8x128xf32>
    %125 = vector.extract_strided_slice %118 {offsets = [0, 128], sizes = [8, 128], strides = [1, 1]} : vector<8x512xf32> to vector<8x128xf32>
    %126 = arith.negf %125 : vector<8x128xf32>
    %127 = math.exp %126 : vector<8x128xf32>
    %cst_35 = arith.constant 1.000000e+00 : f32
    %128 = vector.broadcast %cst_35 : f32 to vector<8x128xf32>
    %129 = arith.addf %128, %127 : vector<8x128xf32>
    %130 = arith.divf %128, %129 : vector<8x128xf32>
    %131 = vector.extract_strided_slice %118 {offsets = [0, 256], sizes = [8, 128], strides = [1, 1]} : vector<8x512xf32> to vector<8x128xf32>
    %132 = math.tanh %131 : vector<8x128xf32>
    %133 = vector.extract_strided_slice %118 {offsets = [0, 384], sizes = [8, 128], strides = [1, 1]} : vector<8x512xf32> to vector<8x128xf32>
    %134 = arith.negf %133 : vector<8x128xf32>
    %135 = math.exp %134 : vector<8x128xf32>
    %cst_36 = arith.constant 1.000000e+00 : f32
    %136 = vector.broadcast %cst_36 : f32 to vector<8x128xf32>
    %137 = arith.addf %136, %135 : vector<8x128xf32>
    %138 = arith.divf %136, %137 : vector<8x128xf32>
    %139 = arith.mulf %130, %107 : vector<8x128xf32>
    %140 = arith.mulf %124, %132 : vector<8x128xf32>
    %141 = arith.addf %139, %140 : vector<8x128xf32>
    %142 = math.tanh %141 : vector<8x128xf32>
    %143 = arith.mulf %138, %142 : vector<8x128xf32>
    %144 = arith.index_cast %113 : i32 to index
    %c0_37 = arith.constant 0 : index
    %145 = vector.load %arg10[%144, %c0_37] : memref<64x128xf32, #tpu.memory_space<vmem>>, vector<8x128xf32>
    tpu.vector_store %arg10[%144, %c0_37], %143 {strides = array<i32>} : memref<64x128xf32, #tpu.memory_space<vmem>>, vector<8x128xf32>,
    %c4_i32 = arith.constant 4 : i32
    %c8_i32_38 = arith.constant 8 : i32
    %146 = arith.muli %c4_i32, %c8_i32_38 : i32
    %147 = tpu.assume_multiple %146, 8 : i32
    %148 = arith.index_cast %147 : i32 to index
    %c0_39 = arith.constant 0 : index
    %149 = vector.load %arg9[%148, %c0_39] : memref<64x512xf32, #tpu.memory_space<vmem>>, vector<8x512xf32>
    %150 = arith.truncf %143 : vector<8x128xf32> to vector<8x128xbf16>
    %cst_40 = arith.constant dense<0.000000e+00> : vector<8x512xf32>
    %151 = tpu.matmul %150, %7, %cst_40 {dimension_numbers = #tpu.dot_dimension_numbers<[1], [0], [0], [1], [0, 0, 1, 1], [], []>} : vector<8x128xbf16>, vector<128x512xbf16>, vector<8x512xf32> -> vector<8x512xf32>
    %152 = arith.addf %149, %151 : vector<8x512xf32>
    %153 = vector.extract_strided_slice %152 {offsets = [0, 0], sizes = [8, 128], strides = [1, 1]} : vector<8x512xf32> to vector<8x128xf32>
    %154 = arith.negf %153 : vector<8x128xf32>
    %155 = math.exp %154 : vector<8x128xf32>
    %cst_41 = arith.constant 1.000000e+00 : f32
    %156 = vector.broadcast %cst_41 : f32 to vector<8x128xf32>
    %157 = arith.addf %156, %155 : vector<8x128xf32>
    %158 = arith.divf %156, %157 : vector<8x128xf32>
    %159 = vector.extract_strided_slice %152 {offsets = [0, 128], sizes = [8, 128], strides = [1, 1]} : vector<8x512xf32> to vector<8x128xf32>
    %160 = arith.negf %159 : vector<8x128xf32>
    %161 = math.exp %160 : vector<8x128xf32>
    %cst_42 = arith.constant 1.000000e+00 : f32
    %162 = vector.broadcast %cst_42 : f32 to vector<8x128xf32>
    %163 = arith.addf %162, %161 : vector<8x128xf32>
    %164 = arith.divf %162, %163 : vector<8x128xf32>
    %165 = vector.extract_strided_slice %152 {offsets = [0, 256], sizes = [8, 128], strides = [1, 1]} : vector<8x512xf32> to vector<8x128xf32>
    %166 = math.tanh %165 : vector<8x128xf32>
    %167 = vector.extract_strided_slice %152 {offsets = [0, 384], sizes = [8, 128], strides = [1, 1]} : vector<8x512xf32> to vector<8x128xf32>
    %168 = arith.negf %167 : vector<8x128xf32>
    %169 = math.exp %168 : vector<8x128xf32>
    %cst_43 = arith.constant 1.000000e+00 : f32
    %170 = vector.broadcast %cst_43 : f32 to vector<8x128xf32>
    %171 = arith.addf %170, %169 : vector<8x128xf32>
    %172 = arith.divf %170, %171 : vector<8x128xf32>
    %173 = arith.mulf %164, %141 : vector<8x128xf32>
    %174 = arith.mulf %158, %166 : vector<8x128xf32>
    %175 = arith.addf %173, %174 : vector<8x128xf32>
    %176 = math.tanh %175 : vector<8x128xf32>
    %177 = arith.mulf %172, %176 : vector<8x128xf32>
    %178 = arith.index_cast %147 : i32 to index
    %c0_44 = arith.constant 0 : index
    %179 = vector.load %arg10[%178, %c0_44] : memref<64x128xf32, #tpu.memory_space<vmem>>, vector<8x128xf32>
    tpu.vector_store %arg10[%178, %c0_44], %177 {strides = array<i32>} : memref<64x128xf32, #tpu.memory_space<vmem>>, vector<8x128xf32>,
    %c5_i32 = arith.constant 5 : i32
    %c8_i32_45 = arith.constant 8 : i32
    %180 = arith.muli %c5_i32, %c8_i32_45 : i32
    %181 = tpu.assume_multiple %180, 8 : i32
    %182 = arith.index_cast %181 : i32 to index
    %c0_46 = arith.constant 0 : index
    %183 = vector.load %arg9[%182, %c0_46] : memref<64x512xf32, #tpu.memory_space<vmem>>, vector<8x512xf32>
    %184 = arith.truncf %177 : vector<8x128xf32> to vector<8x128xbf16>
    %cst_47 = arith.constant dense<0.000000e+00> : vector<8x512xf32>
    %185 = tpu.matmul %184, %7, %cst_47 {dimension_numbers = #tpu.dot_dimension_numbers<[1], [0], [0], [1], [0, 0, 1, 1], [], []>} : vector<8x128xbf16>, vector<128x512xbf16>, vector<8x512xf32> -> vector<8x512xf32>
    %186 = arith.addf %183, %185 : vector<8x512xf32>
    %187 = vector.extract_strided_slice %186 {offsets = [0, 0], sizes = [8, 128], strides = [1, 1]} : vector<8x512xf32> to vector<8x128xf32>
    %188 = arith.negf %187 : vector<8x128xf32>
    %189 = math.exp %188 : vector<8x128xf32>
    %cst_48 = arith.constant 1.000000e+00 : f32
    %190 = vector.broadcast %cst_48 : f32 to vector<8x128xf32>
    %191 = arith.addf %190, %189 : vector<8x128xf32>
    %192 = arith.divf %190, %191 : vector<8x128xf32>
    %193 = vector.extract_strided_slice %186 {offsets = [0, 128], sizes = [8, 128], strides = [1, 1]} : vector<8x512xf32> to vector<8x128xf32>
    %194 = arith.negf %193 : vector<8x128xf32>
    %195 = math.exp %194 : vector<8x128xf32>
    %cst_49 = arith.constant 1.000000e+00 : f32
    %196 = vector.broadcast %cst_49 : f32 to vector<8x128xf32>
    %197 = arith.addf %196, %195 : vector<8x128xf32>
    %198 = arith.divf %196, %197 : vector<8x128xf32>
    %199 = vector.extract_strided_slice %186 {offsets = [0, 256], sizes = [8, 128], strides = [1, 1]} : vector<8x512xf32> to vector<8x128xf32>
    %200 = math.tanh %199 : vector<8x128xf32>
    %201 = vector.extract_strided_slice %186 {offsets = [0, 384], sizes = [8, 128], strides = [1, 1]} : vector<8x512xf32> to vector<8x128xf32>
    %202 = arith.negf %201 : vector<8x128xf32>
    %203 = math.exp %202 : vector<8x128xf32>
    %cst_50 = arith.constant 1.000000e+00 : f32
    %204 = vector.broadcast %cst_50 : f32 to vector<8x128xf32>
    %205 = arith.addf %204, %203 : vector<8x128xf32>
    %206 = arith.divf %204, %205 : vector<8x128xf32>
    %207 = arith.mulf %198, %175 : vector<8x128xf32>
    %208 = arith.mulf %192, %200 : vector<8x128xf32>
    %209 = arith.addf %207, %208 : vector<8x128xf32>
    %210 = math.tanh %209 : vector<8x128xf32>
    %211 = arith.mulf %206, %210 : vector<8x128xf32>
    %212 = arith.index_cast %181 : i32 to index
    %c0_51 = arith.constant 0 : index
    %213 = vector.load %arg10[%212, %c0_51] : memref<64x128xf32, #tpu.memory_space<vmem>>, vector<8x128xf32>
    tpu.vector_store %arg10[%212, %c0_51], %211 {strides = array<i32>} : memref<64x128xf32, #tpu.memory_space<vmem>>, vector<8x128xf32>,
    %c6_i32 = arith.constant 6 : i32
    %c8_i32_52 = arith.constant 8 : i32
    %214 = arith.muli %c6_i32, %c8_i32_52 : i32
    %215 = tpu.assume_multiple %214, 8 : i32
    %216 = arith.index_cast %215 : i32 to index
    %c0_53 = arith.constant 0 : index
    %217 = vector.load %arg9[%216, %c0_53] : memref<64x512xf32, #tpu.memory_space<vmem>>, vector<8x512xf32>
    %218 = arith.truncf %211 : vector<8x128xf32> to vector<8x128xbf16>
    %cst_54 = arith.constant dense<0.000000e+00> : vector<8x512xf32>
    %219 = tpu.matmul %218, %7, %cst_54 {dimension_numbers = #tpu.dot_dimension_numbers<[1], [0], [0], [1], [0, 0, 1, 1], [], []>} : vector<8x128xbf16>, vector<128x512xbf16>, vector<8x512xf32> -> vector<8x512xf32>
    %220 = arith.addf %217, %219 : vector<8x512xf32>
    %221 = vector.extract_strided_slice %220 {offsets = [0, 0], sizes = [8, 128], strides = [1, 1]} : vector<8x512xf32> to vector<8x128xf32>
    %222 = arith.negf %221 : vector<8x128xf32>
    %223 = math.exp %222 : vector<8x128xf32>
    %cst_55 = arith.constant 1.000000e+00 : f32
    %224 = vector.broadcast %cst_55 : f32 to vector<8x128xf32>
    %225 = arith.addf %224, %223 : vector<8x128xf32>
    %226 = arith.divf %224, %225 : vector<8x128xf32>
    %227 = vector.extract_strided_slice %220 {offsets = [0, 128], sizes = [8, 128], strides = [1, 1]} : vector<8x512xf32> to vector<8x128xf32>
    %228 = arith.negf %227 : vector<8x128xf32>
    %229 = math.exp %228 : vector<8x128xf32>
    %cst_56 = arith.constant 1.000000e+00 : f32
    %230 = vector.broadcast %cst_56 : f32 to vector<8x128xf32>
    %231 = arith.addf %230, %229 : vector<8x128xf32>
    %232 = arith.divf %230, %231 : vector<8x128xf32>
    %233 = vector.extract_strided_slice %220 {offsets = [0, 256], sizes = [8, 128], strides = [1, 1]} : vector<8x512xf32> to vector<8x128xf32>
    %234 = math.tanh %233 : vector<8x128xf32>
    %235 = vector.extract_strided_slice %220 {offsets = [0, 384], sizes = [8, 128], strides = [1, 1]} : vector<8x512xf32> to vector<8x128xf32>
    %236 = arith.negf %235 : vector<8x128xf32>
    %237 = math.exp %236 : vector<8x128xf32>
    %cst_57 = arith.constant 1.000000e+00 : f32
    %238 = vector.broadcast %cst_57 : f32 to vector<8x128xf32>
    %239 = arith.addf %238, %237 : vector<8x128xf32>
    %240 = arith.divf %238, %239 : vector<8x128xf32>
    %241 = arith.mulf %232, %209 : vector<8x128xf32>
    %242 = arith.mulf %226, %234 : vector<8x128xf32>
    %243 = arith.addf %241, %242 : vector<8x128xf32>
    %244 = math.tanh %243 : vector<8x128xf32>
    %245 = arith.mulf %240, %244 : vector<8x128xf32>
    %246 = arith.index_cast %215 : i32 to index
    %c0_58 = arith.constant 0 : index
    %247 = vector.load %arg10[%246, %c0_58] : memref<64x128xf32, #tpu.memory_space<vmem>>, vector<8x128xf32>
    tpu.vector_store %arg10[%246, %c0_58], %245 {strides = array<i32>} : memref<64x128xf32, #tpu.memory_space<vmem>>, vector<8x128xf32>,
    %c7_i32 = arith.constant 7 : i32
    %c8_i32_59 = arith.constant 8 : i32
    %248 = arith.muli %c7_i32, %c8_i32_59 : i32
    %249 = tpu.assume_multiple %248, 8 : i32
    %250 = arith.index_cast %249 : i32 to index
    %c0_60 = arith.constant 0 : index
    %251 = vector.load %arg9[%250, %c0_60] : memref<64x512xf32, #tpu.memory_space<vmem>>, vector<8x512xf32>
    %252 = arith.truncf %245 : vector<8x128xf32> to vector<8x128xbf16>
    %cst_61 = arith.constant dense<0.000000e+00> : vector<8x512xf32>
    %253 = tpu.matmul %252, %7, %cst_61 {dimension_numbers = #tpu.dot_dimension_numbers<[1], [0], [0], [1], [0, 0, 1, 1], [], []>} : vector<8x128xbf16>, vector<128x512xbf16>, vector<8x512xf32> -> vector<8x512xf32>
    %254 = arith.addf %251, %253 : vector<8x512xf32>
    %255 = vector.extract_strided_slice %254 {offsets = [0, 0], sizes = [8, 128], strides = [1, 1]} : vector<8x512xf32> to vector<8x128xf32>
    %256 = arith.negf %255 : vector<8x128xf32>
    %257 = math.exp %256 : vector<8x128xf32>
    %cst_62 = arith.constant 1.000000e+00 : f32
    %258 = vector.broadcast %cst_62 : f32 to vector<8x128xf32>
    %259 = arith.addf %258, %257 : vector<8x128xf32>
    %260 = arith.divf %258, %259 : vector<8x128xf32>
    %261 = vector.extract_strided_slice %254 {offsets = [0, 128], sizes = [8, 128], strides = [1, 1]} : vector<8x512xf32> to vector<8x128xf32>
    %262 = arith.negf %261 : vector<8x128xf32>
    %263 = math.exp %262 : vector<8x128xf32>
    %cst_63 = arith.constant 1.000000e+00 : f32
    %264 = vector.broadcast %cst_63 : f32 to vector<8x128xf32>
    %265 = arith.addf %264, %263 : vector<8x128xf32>
    %266 = arith.divf %264, %265 : vector<8x128xf32>
    %267 = vector.extract_strided_slice %254 {offsets = [0, 256], sizes = [8, 128], strides = [1, 1]} : vector<8x512xf32> to vector<8x128xf32>
    %268 = math.tanh %267 : vector<8x128xf32>
    %269 = vector.extract_strided_slice %254 {offsets = [0, 384], sizes = [8, 128], strides = [1, 1]} : vector<8x512xf32> to vector<8x128xf32>
    %270 = arith.negf %269 : vector<8x128xf32>
    %271 = math.exp %270 : vector<8x128xf32>
    %cst_64 = arith.constant 1.000000e+00 : f32
    %272 = vector.broadcast %cst_64 : f32 to vector<8x128xf32>
    %273 = arith.addf %272, %271 : vector<8x128xf32>
    %274 = arith.divf %272, %273 : vector<8x128xf32>
    %275 = arith.mulf %266, %243 : vector<8x128xf32>
    %276 = arith.mulf %260, %268 : vector<8x128xf32>
    %277 = arith.addf %275, %276 : vector<8x128xf32>
    %278 = math.tanh %277 : vector<8x128xf32>
    %279 = arith.mulf %274, %278 : vector<8x128xf32>
    %280 = arith.index_cast %249 : i32 to index
    %c0_65 = arith.constant 0 : index
    %281 = vector.load %arg10[%280, %c0_65] : memref<64x128xf32, #tpu.memory_space<vmem>>, vector<8x128xf32>
    tpu.vector_store %arg10[%280, %c0_65], %279 {strides = array<i32>} : memref<64x128xf32, #tpu.memory_space<vmem>>, vector<8x128xf32>,
    %c8_i32_66 = arith.constant 8 : i32
    %c0_67 = arith.constant 0 : index
    %c0_68 = arith.constant 0 : index
    %282 = vector.load %arg7[%c0_67, %c0_68] : memref<64x64xf32, #tpu.memory_space<vmem>>, vector<64x64xf32>
    %c0_69 = arith.constant 0 : index
    %c0_70 = arith.constant 0 : index
    %283 = vector.load %arg10[%c0_69, %c0_70] : memref<64x128xf32, #tpu.memory_space<vmem>>, vector<64x128xf32>
    %cst_71 = arith.constant dense<0.000000e+00> : vector<64x128xf32>
    %284 = tpu.matmul %282, %283, %cst_71 {dimension_numbers = #tpu.dot_dimension_numbers<[1], [0], [0], [1], [0, 0, 1, 1], [], []>} : vector<64x64xf32>, vector<64x128xf32>, vector<64x128xf32> -> vector<64x128xf32>
    %285 = arith.truncf %284 : vector<64x128xf32> to vector<64x128xbf16>
    %c0_72 = arith.constant 0 : index
    %c0_73 = arith.constant 0 : index
    %286 = vector.load %arg5[%c0_72, %c0_73] : memref<128x128xbf16, #tpu.memory_space<vmem>>, vector<128x128xbf16>
    %cst_74 = arith.constant dense<0.000000e+00> : vector<64x128xf32>
    %287 = tpu.matmul %285, %286, %cst_74 {dimension_numbers = #tpu.dot_dimension_numbers<[1], [0], [0], [1], [0, 0, 1, 1], [], []>} : vector<64x128xbf16>, vector<128x128xbf16>, vector<64x128xf32> -> vector<64x128xf32>
    %c0_75 = arith.constant 0 : index
    %c0_76 = arith.constant 0 : index
    %288 = vector.load %arg6[%c0_75, %c0_76] : memref<1x128xf32, #tpu.memory_space<vmem>>, vector<1x128xf32>
    %289 = vector.broadcast %288 : vector<1x128xf32> to vector<64x128xf32>
    %290 = arith.addf %287, %289 : vector<64x128xf32>
    %c0_77 = arith.constant 0 : index
    %c0_78 = arith.constant 0 : index
    %291 = vector.load %arg8[%c0_77, %c0_78] : memref<64x128xf32, #tpu.memory_space<vmem>>, vector<64x128xf32>
    tpu.vector_store %arg8[%c0_77, %c0_78], %290 {strides = array<i32>} : memref<64x128xf32, #tpu.memory_space<vmem>>, vector<64x128xf32>,
    return
  }
  func.func @transform_0(%arg0: i32) -> (i32, i32) {
    %c0_i32 = arith.constant 0 : i32
    %c0_i32_0 = arith.constant 0 : i32
    %c0_i32_1 = arith.constant 0 : i32
    return %c0_i32, %c0_i32_0 : i32, i32
  }
  func.func @transform_1(%arg0: i32) -> (i32, i32) {
    %c0_i32 = arith.constant 0 : i32
    %c0_i32_0 = arith.constant 0 : i32
    %c0_i32_1 = arith.constant 0 : i32
    return %c0_i32, %c0_i32_0 : i32, i32
  }
  func.func @transform_2(%arg0: i32) -> (i32, i32) {
    %c0_i32 = arith.constant 0 : i32
    %c0_i32_0 = arith.constant 0 : i32
    %c0_i32_1 = arith.constant 0 : i32
    return %c0_i32, %c0_i32_0 : i32, i32
  }
  func.func @transform_3(%arg0: i32) -> (i32, i32) {
    %c0_i32 = arith.constant 0 : i32
    %c0_i32_0 = arith.constant 0 : i32
    %c0_i32_1 = arith.constant 0 : i32
    return %c0_i32, %c0_i32_0 : i32, i32
  }
  func.func @transform_4(%arg0: i32) -> (i32, i32) {
    %c0_i32 = arith.constant 0 : i32
    %c0_i32_0 = arith.constant 0 : i32
    %c0_i32_1 = arith.constant 0 : i32
    return %c0_i32, %c0_i32_0 : i32, i32
  }
  func.func @transform_5(%arg0: i32) -> (i32, i32) {
    %c0_i32 = arith.constant 0 : i32
    %c0_i32_0 = arith.constant 0 : i32
    %c0_i32_1 = arith.constant 0 : i32
    return %c0_i32, %c0_i32_0 : i32, i32
  }
  func.func @transform_6(%arg0: i32) -> (i32, i32) {
    %c0_i32 = arith.constant 0 : i32
    %c0_i32_0 = arith.constant 0 : i32
    %c0_i32_1 = arith.constant 0 : i32
    return %c0_i32, %c0_i32_0 : i32, i32
  }
  func.func @transform_7(%arg0: i32) -> (i32, i32) {
    %c0_i32 = arith.constant 0 : i32
    %c0_i32_0 = arith.constant 0 : i32
    %c0_i32_1 = arith.constant 0 : i32
    return %c0_i32, %c0_i32_0 : i32, i32
  }
}

</mosaic_0001>

<bundles_post_ra>
// kernel: tpu_custom_call.1
= control target key start
LH: loop header
LB: loop body
LE: loop exit
PB: predicated region body
PF: predicated region fallthrough
CT: control target
= control target key end

     0   :  { %12 = vsyncpa [#allocation5], 0  ;;  %s2990_s0 = inlined_call_operand.vmem [shape: bf16[64,32], index: 0, kind: input, shape index: {}]   ;;  %s2991_s1 = inlined_call_operand.hbm [shape: bf16[32,512], index: 1, kind: input, shape index: {}]   ;;  %s2992_s2 = inlined_call_operand.hbm [shape: bf16[128,512], index: 2, kind: input, shape index: {}]   ;;  %s2993_s3 = inlined_call_operand.vmem [shape: f32[1,512], index: 3, kind: input, shape index: {}]   ;;  %s2994_s4 = inlined_call_operand.hbm [shape: bf16[128,128], index: 4, kind: input, shape index: {}]   ;;  %s2995_s5 = inlined_call_operand.vmem [shape: f32[1,128], index: 5, kind: input, shape index: {}]   ;;  %s2996_s6 = inlined_call_operand.hbm [shape: f32[64,64], index: 6, kind: input, shape index: {}]   ;;  %s2997_s7 = inlined_call_operand.hbm [shape: f32[64,128], index: 7, kind: output, shape index: {}]  }
   0x1   :  { %13 = vsyncpa [#allocation8], 0 }
   0x2   :  { %14 = vsyncpa [#allocation11], 0 }
   0x3   :  { %15 = vsyncpa [#allocation6], 0  ;;  %s35_s26 = sshll.u32 %s2992_s2, 4  ;;  %s2360_s27 = smov [#allocation7]   ;;  %s36_s26 = int_to_ptr.hbm [resolvable:$true] %s35_s26 }
   0x4   :  { %s37_s28 = sshll.u32 %s2360_s27, 4  ;;  %s22_s8 = sshll.u32 %s2991_s1, 4  ;;  %s38_s28 = int_to_ptr.vmem [resolvable:$true] %s37_s28  ;;  %s23_s8 = int_to_ptr.hbm [resolvable:$true] %s22_s8 }
   0x5   :  { %s2361_s9 = smov 256   ;;  %s2362_s10 = smov 16  }
   0x6   :  { %43 = dma.hbm_to_vmem [thread:$0]  %s36_s26, 4096, %s38_s28, [#allocation8], %s2361_s9, %s2361_s9, %s2362_s10  }
   0x7   :  { %s2363_s11 = smov [#allocation4]   ;;  %s50_s15 = sshll.u32 %s2994_s4, 4  ;;  %s51_s15 = int_to_ptr.hbm [resolvable:$true] %s50_s15 }
   0x8   :  { %s24_s12 = sshll.u32 %s2363_s11, 4  ;;  %s2364_s2 = smov [#allocation9]   ;;  %s25_s12 = int_to_ptr.vmem [resolvable:$true] %s24_s12 }
   0x9   :  { %30 = dma.hbm_to_vmem [thread:$0]  %s23_s8, 1024, %s25_s12, [#allocation5], %s2361_s9, %s2361_s9, %s2362_s10  }
   0xa   :  { %s52_s16 = sshll.u32 %s2364_s2, 4  ;;  %s65_s1 = sshll.u32 %s2996_s6, 4  ;;  %s53_s16 = int_to_ptr.vmem [resolvable:$true] %s52_s16  ;;  %s66_s1 = int_to_ptr.hbm [resolvable:$true] %s65_s1 }
   0xb   :  { %s2365_s19 = smov 64   ;;  %s2366_s20 = smov 4  }
   0xc   :  { %58 = dma.hbm_to_vmem [thread:$0]  %s51_s15, 1024, %s53_s16, [#allocation8], %s2365_s19, %s2365_s19, %s2366_s20  }
   0xd   :  { %s2367_s21 = smov [#allocation10]   ;;  %s2368_s23 = smov 128  }
   0xe   :  { %s67_s22 = sshll.u32 %s2367_s21, 4  ;;  %s2369_s24 = smov 8   ;;  %s68_s22 = int_to_ptr.vmem [resolvable:$true] %s67_s22 }
   0xf   :  { %73 = dma.hbm_to_vmem [thread:$0]  %s66_s1, 1024, %s68_s22, [#allocation11], %s2368_s23, %s2368_s23, %s2369_s24  }
  0x10   :  { %2352 = dma.done.wait [#allocation5], 1024  }
  0x11   :  { %2353 = vsyncadd [#allocation5], 4294966272 }
  0x12   :  { %2354 = dma.done.wait [#allocation8], 5120  }
  0x13   :  { %2355 = vsyncadd [#allocation8], 4294962176 }
  0x14   :  { %2356 = dma.done.wait [#allocation11], 1024  }
  0x15   :  { %2357 = vsyncadd [#allocation11], 4294966272  ;;  %v1813_v0 = vld [vmem:[#allocation4 + $0x20] sm:$0xf]  ;;  %v2045_v1 = vld [vmem:[#allocation4 + $0x2c] sm:$0xf0] }
  0x16   :  { %v2043_v2 = vld [vmem:[#allocation4 + $0x24] sm:$0xf]  ;;  %v1814_v3 = vor.u32 %v2045_v1, %v1813_v0  ;;  %v1815_v4 = vld [vmem:[#allocation4 + $0x30] sm:$0xf0]  ;;  %v1797_v5 = vld [vmem:[#allocation4] sm:$0xf] }
  0x17   :  { %v2041_v6 = vld [vmem:[#allocation4 + $0xc] sm:$0xf0]  ;;  %v1818_v7 = vor.u32 %v2043_v2, %v1815_v4  ;;  %v2039_v8 = vld [vmem:[#allocation4 + $0x4] sm:$0xf]  ;;  %v1799_v9 = vld [vmem:[#allocation4 + $0x10] sm:$0xf0] }
  0x18   :  { %2087 = vmatpush.bf16.msra.mxu3 %v1814_v3  ;;  %v1798_v10 = vor.u32 %v2041_v6, %v1797_v5  ;;  %v2044_v11 = vld [vmem:[#allocation4 + $0x2c] sm:$0xf]  ;;  %v1823_v12 = vld [vmem:[#allocation4 + $0x38] sm:$0xf0]  ;;  %196 = vmatpush.bf16.msra.mxu0 %v1814_v3  ;;  %v1821_v13 = vld [vmem:[#allocation4 + $0x28] sm:$0xf]  ;;  %v1802_v14 = vor.u32 %v2039_v8, %v1799_v9 }
  0x19   :  { %2089 = vmatpush.bf16.msra.mxu2 %v1818_v7  ;;  %v2430_v15 = vld [vmem:[%s2990_s0 + $0x10] sm:$0xff]  ;;  %v1826_v16 = vor.u32 %v2044_v11, %v1823_v12  ;;  %225 = vmatpush.bf16.msra.mxu1 %v1818_v7  ;;  %v2046_v17 = vld [vmem:[#allocation4 + $0x34] sm:$0xf0]  ;;  %v2435_v18 = vld [vmem:[%s2990_s0] sm:$0xff]  ;;  %vm177_vm0 = vcmask 261120   ;;  %s1757_s13 = sshll.u32 %s2997_s7, 4  ;;  %s1758_s13 = int_to_ptr.hbm [resolvable:$true] %s1757_s13 }
  0x1a   :  { %v1822_v19 = vor.u32 %v2046_v17, %v1821_v13  ;;  %v2040_v20 = vld [vmem:[#allocation4 + $0xc] sm:$0xf]  ;;  %v1807_v21 = vld [vmem:[#allocation4 + $0x18] sm:$0xf0]  ;;  %v1957_v22 = vld [vmem:[#allocation7 + $0xe0] sm:$0xf] }
  0x1b   :  { %v2077_v23 = vld [vmem:[#allocation7 + $0xec] sm:$0xf0]  ;;  %v2075_v24 = vld [vmem:[#allocation7 + $0xe4] sm:$0xf]  ;;  %v1959_v25 = vld [vmem:[#allocation7 + $0xf0] sm:$0xf0]  ;;  %v1810_v27 = vor.u32 %v2040_v20, %v1807_v21 }
  0x1c   :  { %2088 = vmatpush.bf16.msra.mxu3 %v1798_v10  ;;  %197 = vmatpush.bf16.msra.mxu0 %v1798_v10  ;;  %v2437_v26 = vor.u32 %v2077_v23, %v1957_v22  ;;  %v1941_v28 = vld [vmem:[#allocation7 + $0xc0] sm:$0xf]  ;;  %v2073_v29 = vld [vmem:[#allocation7 + $0xcc] sm:$0xf0]  ;;  %v2439_v30 = vor.u32 %v2075_v24, %v1959_v25  ;;  %v1805_v31 = vld [vmem:[#allocation4 + $0x8] sm:$0xf] }
  0x1d   :  { %2090 = vmatpush.bf16.msra.mxu2 %v1802_v14  ;;  %226 = vmatpush.bf16.msra.mxu1 %v1802_v14  ;;  %v2071_v32 = vld [vmem:[#allocation7 + $0xc4] sm:$0xf]  ;;  %v1943_v33 = vld [vmem:[#allocation7 + $0xd0] sm:$0xf0]  ;;  %v2042_v34 = vld [vmem:[#allocation4 + $0x14] sm:$0xf0]  ;;  %v2448_v35 = vor.u32 %v2073_v29, %v1941_v28 }
  0x1e   :  { %v1806_v36 = vor.u32 %v2042_v34, %v1805_v31  ;;  %v1925_v37 = vld [vmem:[#allocation7 + $0xa0] sm:$0xf]  ;;  %v2069_v38 = vld [vmem:[#allocation7 + $0xac] sm:$0xf0]  ;;  %v2453_v39 = vor.u32 %v2071_v32, %v1943_v33  ;;  %v2076_v40 = vld [vmem:[#allocation7 + $0xec] sm:$0xf] }
  0x1f   :  { %1829 = vmatmul.msk.bf16.vlgmr.msra.gmra.mxu3 %vm177_vm0, %v2430_v15  ;;  %1827 = vmatmul.msk.bf16.vlgmr.msra.gmra.mxu0 %vm177_vm0, %v2435_v18  ;;  %v1967_v41 = vld [vmem:[#allocation7 + $0xf8] sm:$0xf0]  ;;  %v2067_v42 = vld [vmem:[#allocation7 + $0xa4] sm:$0xf]  ;;  %v1927_v43 = vld [vmem:[#allocation7 + $0xb0] sm:$0xf0]  ;;  %v2458_v45 = vor.u32 %v2069_v38, %v1925_v37 }
  0x20   :  { %283 = vmatpush.bf16.msrb.mxu3 %v1826_v16  ;;  %1833 = vmatmul.msk.bf16.vlgmr.msra.gmra.mxu2 %vm177_vm0, %v2430_v15  ;;  %v2455_v44 = vor.u32 %v2076_v40, %v1967_v41  ;;  %v1909_v46 = vld [vmem:[#allocation7 + $0x80] sm:$0xf]  ;;  %v2065_v47 = vld [vmem:[#allocation7 + $0x8c] sm:$0xf0]  ;;  %v2072_v48 = vld [vmem:[#allocation7 + $0xcc] sm:$0xf]  ;;  %v2462_v49 = vor.u32 %v2067_v42, %v1927_v43 }
  0x21   :  { %254 = vmatpush.bf16.msrb.mxu2 %v1822_v19  ;;  %537 = vmatpush.bf16.msrb.mxu0 %v2437_v26  ;;  %v1951_v50 = vld [vmem:[#allocation7 + $0xd8] sm:$0xf0]  ;;  %v1965_v51 = vld [vmem:[#allocation7 + $0xe8] sm:$0xf]  ;;  %v2078_v52 = vld [vmem:[#allocation7 + $0xf4] sm:$0xf0]  ;;  %v2469_v57 = vor.u32 %v2065_v47, %v1909_v46 }
  0x22   :  { %1831 = vmatmul.msk.bf16.vlgmr.msra.gmra.mxu1 %vm177_vm0, %v2435_v18  ;;  %v2063_v53 = vld [vmem:[#allocation7 + $0x84] sm:$0xf]  ;;  %v1911_v54 = vld [vmem:[#allocation7 + $0x90] sm:$0xf0]  ;;  %v2464_v55 = vor.u32 %v2072_v48, %v1951_v50  ;;  %v2466_v56 = vor.u32 %v2078_v52, %v1965_v51  ;;  %v1893_v58 = vld [vmem:[#allocation7 + $0x60] sm:$0xf] }
  0x23   :  { %550 = vmatpush.bf16.msrb.mxu1 %v2439_v30  ;;  %v2061_v59 = vld [vmem:[#allocation7 + $0x6c] sm:$0xf0]  ;;  %v2476_v60 = vld [vmem:[%s2990_s0 + $0x18] sm:$0xff]  ;;  %v2479_v61 = vor.u32 %v2063_v53, %v1911_v54  ;;  %v2484_v62 = vld [vmem:[%s2990_s0 + $0x8] sm:$0xff]  ;;  %v2370_v38 = vmov 0  }
  0x24   :  { %284 = vmatpush.bf16.msrb.mxu3 %v1810_v27  ;;  %v2059_v63 = vld [vmem:[#allocation7 + $0x64] sm:$0xf]  ;;  %v1895_v0 = vld [vmem:[#allocation7 + $0x70] sm:$0xf0]  ;;  %v2487_v1 = vor.u32 %v2061_v59, %v1893_v58  ;;  %v1877_v2 = vld [vmem:[#allocation7 + $0x40] sm:$0xf] }
  0x25   :  { %255 = vmatpush.bf16.msrb.mxu2 %v1806_v36  ;;  %538 = vmatpush.bf16.msrb.mxu0 %v2448_v35  ;;  %v2057_v3 = vld [vmem:[#allocation7 + $0x4c] sm:$0xf0]  ;;  %v2490_v4 = vor.u32 %v2059_v63, %v1895_v0  ;;  %v2055_v5 = vld [vmem:[#allocation7 + $0x44] sm:$0xf]  ;;  %v1879_v6 = vld [vmem:[#allocation7 + $0x50] sm:$0xf0] }
  0x26   :  { %v1861_v7 = vld [vmem:[#allocation7 + $0x20] sm:$0xf]  ;;  %v2053_v8 = vld [vmem:[#allocation7 + $0x2c] sm:$0xf0]  ;;  %v2499_v9 = vor.u32 %v2057_v3, %v1877_v2  ;;  %v2068_v10 = vld [vmem:[#allocation7 + $0xac] sm:$0xf]  ;;  %v2506_v19 = vor.u32 %v2055_v5, %v1879_v6 }
  0x27   :  { %551 = vmatpush.bf16.msrb.mxu1 %v2453_v39  ;;  %v1935_v11 = vld [vmem:[#allocation7 + $0xb8] sm:$0xf0]  ;;  %v1949_v12 = vld [vmem:[#allocation7 + $0xc8] sm:$0xf]  ;;  %v2074_v14 = vld [vmem:[#allocation7 + $0xd4] sm:$0xf0]  ;;  %v2514_v27 = vor.u32 %v2053_v8, %v1861_v7 }
  0x28   :  { %576 = vmatpush.bf16.msra.mxu3 %v2455_v44  ;;  %v2503_v13 = vor.u32 %v2068_v10, %v1935_v11  ;;  %v2064_v16 = vld [vmem:[#allocation7 + $0x8c] sm:$0xf]  ;;  %v1919_v17 = vld [vmem:[#allocation7 + $0x98] sm:$0xf0]  ;;  %v2508_v20 = vor.u32 %v2074_v14, %v1949_v12  ;;  %v1933_v21 = vld [vmem:[#allocation7 + $0xa8] sm:$0xf] }
  0x29   :  { %539 = vmatpush.bf16.msrb.mxu0 %v2458_v45  ;;  %563 = vmatpush.bf16.msra.mxu2 %v2466_v56  ;;  %v2070_v22 = vld [vmem:[#allocation7 + $0xb4] sm:$0xf0]  ;;  %v2051_v23 = vld [vmem:[#allocation7 + $0x24] sm:$0xf]  ;;  %v1863_v24 = vld [vmem:[#allocation7 + $0x30] sm:$0xf0]  ;;  %v2511_v25 = vor.u32 %v2064_v16, %v1919_v17 }
  0x2a   :  { %v2517_v28 = vor.u32 %v2070_v22, %v1933_v21  ;;  %v1845_v29 = vld [vmem:[#allocation7] sm:$0xf]  ;;  %v2049_v31 = vld [vmem:[#allocation7 + $0xc] sm:$0xf0]  ;;  %v2520_v32 = vor.u32 %v2051_v23, %v1863_v24  ;;  %v2047_v33 = vld [vmem:[#allocation7 + $0x4] sm:$0xf] }
  0x2b   :  { %552 = vmatpush.bf16.msrb.mxu1 %v2462_v49  ;;  %v1847_v34 = vld [vmem:[#allocation7 + $0x10] sm:$0xf0]  ;;  %v2524_v36 = vor.u32 %v2049_v31, %v1845_v29  ;;  %v2060_v40 = vld [vmem:[#allocation7 + $0x6c] sm:$0xf]  ;;  %v1903_v41 = vld [vmem:[#allocation7 + $0x78] sm:$0xf0] }
  0x2c   :  { %577 = vmatpush.bf16.msra.mxu3 %v2464_v55  ;;  %v2528_v37 = vor.u32 %v2047_v33, %v1847_v34  ;;  %v1917_v42 = vld [vmem:[#allocation7 + $0x88] sm:$0xf]  ;;  %v2540_v43 = vor.u32 %v2060_v40, %v1903_v41  ;;  %v2066_v46 = vld [vmem:[#allocation7 + $0x94] sm:$0xf0]  ;;  %v2056_v47 = vld [vmem:[#allocation7 + $0x4c] sm:$0xf] }
  0x2d   :  { %540 = vmatpush.bf16.msrb.mxu0 %v2469_v57  ;;  %564 = vmatpush.bf16.msra.mxu2 %v2508_v20  ;;  %v1887_v48 = vld [vmem:[#allocation7 + $0x58] sm:$0xf0]  ;;  %v2543_v50 = vor.u32 %v2066_v46, %v1917_v42  ;;  %v1901_v51 = vld [vmem:[#allocation7 + $0x68] sm:$0xf]  ;;  %v2062_v52 = vld [vmem:[#allocation7 + $0x74] sm:$0xf0] }
  0x2e   :  { %v2549_v53 = vor.u32 %v2062_v52, %v1901_v51  ;;  %v2052_v54 = vld [vmem:[#allocation7 + $0x2c] sm:$0xf]  ;;  %v1871_v58 = vld [vmem:[#allocation7 + $0x38] sm:$0xf0]  ;;  %v1885_v59 = vld [vmem:[#allocation7 + $0x48] sm:$0xf] }
  0x2f   :  { %553 = vmatpush.bf16.msrb.mxu1 %v2479_v61  ;;  %1830 = vmatmul.msk.bf16.gmra.mxu3 %vm177_vm0, %v2476_v60  ;;  %v2564_v63 = vor.u32 %v2052_v54, %v1871_v58  ;;  %v2058_v0 = vld [vmem:[#allocation7 + $0x54] sm:$0xf0]  ;;  %v1869_v2 = vld [vmem:[#allocation7 + $0x28] sm:$0xf]  ;;  %v2048_v6 = vld [vmem:[#allocation7 + $0xc] sm:$0xf] }
  0x30   :  { %1828 = vmatmul.msk.bf16.gmra.mxu0 %vm177_vm0, %v2484_v62  ;;  %1834 = vmatmul.msk.bf16.gmra.mxu2 %vm177_vm0, %v2476_v60  ;;  %v2054_v3 = vld [vmem:[#allocation7 + $0x34] sm:$0xf0]  ;;  %v2567_v5 = vor.u32 %v2058_v0, %v1885_v59  ;;  %v1855_v7 = vld [vmem:[#allocation7 + $0x18] sm:$0xf0]  ;;  %v1853_v10 = vld [vmem:[#allocation7 + $0x8] sm:$0xf] }
  0x31   :  { %541 = vmatpush.bf16.msrb.mxu0 %v2487_v1  ;;  %578 = vmatpush.bf16.msra.mxu3 %v2503_v13  ;;  %v2570_v8 = vor.u32 %v2048_v6, %v1855_v7  ;;  %v2050_v11 = vld [vmem:[#allocation7 + $0x14] sm:$0xf0] }
  0x32   :  { %1832 = vmatmul.msk.bf16.gmra.mxu1 %vm177_vm0, %v2484_v62  ;;  %565 = vmatpush.bf16.msra.mxu2 %v2517_v28  ;;  %v2579_v12 = vor.u32 %v2050_v11, %v1853_v10 }
  0x33   :  { %554 = vmatpush.bf16.msrb.mxu1 %v2490_v4 }
  0x35   :  { %542 = vmatpush.bf16.msrb.mxu0 %v2499_v9  ;;  %579 = vmatpush.bf16.msra.mxu3 %v2511_v25 }
  0x36   :  { %566 = vmatpush.bf16.msra.mxu2 %v2543_v50 }
  0x37   :  { %555 = vmatpush.bf16.msrb.mxu1 %v2506_v19 }
  0x39   :  { %543 = vmatpush.bf16.msrb.mxu0 %v2514_v27  ;;  %580 = vmatpush.bf16.msra.mxu3 %v2540_v43 }
  0x3a   :  { %567 = vmatpush.bf16.msra.mxu2 %v2549_v53 }
  0x3b   :  { %556 = vmatpush.bf16.msrb.mxu1 %v2520_v32 }
  0x3d   :  { %544 = vmatpush.bf16.msrb.mxu0 %v2524_v36 }
  0x3e   :  { %568 = vmatpush.bf16.msra.mxu2 %v2567_v5 }
  0x3f   :  { %557 = vmatpush.bf16.msrb.mxu1 %v2528_v37  ;;  %1839 = vmatmul.msk.bf16.vlgmr.msrb.gmra.mxu3 %vm177_vm0, %v2435_v18 }
  0x40   :  { %545 = vmatmul.bf16.vlgmr.msrb.gmra.mxu0 %v2370_v38  ;;  %1835 = vmatmul.msk.bf16.vlgmr.msrb.gmra.mxu2 %vm177_vm0, %v2435_v18  ;;  %v2546_v18 = vor.u32 %v2056_v47, %v1887_v48 }
  0x41   :  { %665 = vmatpush.bf16.msra.mxu0 %v2437_v26 }
  0x42   :  { %558 = vmatmul.bf16.vlgmr.msrb.gmra.mxu1 %v2370_v38  ;;  %581 = vmatpush.bf16.msra.mxu3 %v2546_v18 }
  0x43   :  { %678 = vmatpush.bf16.msra.mxu1 %v2439_v30 }
  0x45   :  { %666 = vmatpush.bf16.msra.mxu0 %v2448_v35 }
  0x46   :  { %582 = vmatpush.bf16.msra.mxu3 %v2564_v63 }
  0x47   :  { %679 = vmatpush.bf16.msra.mxu1 %v2453_v39 }
  0x49   :  { %667 = vmatpush.bf16.msra.mxu0 %v2458_v45 }
  0x4a   :  { %583 = vmatpush.bf16.msra.mxu3 %v2570_v8 }
  0x4b   :  { %680 = vmatpush.bf16.msra.mxu1 %v2462_v49 }
  0x4d   :  { %668 = vmatpush.bf16.msra.mxu0 %v2469_v57 }
  0x4e   :  { %704 = vmatpush.bf16.msrb.mxu3 %v2455_v44 }
  0x4f   :  { %681 = vmatpush.bf16.msra.mxu1 %v2479_v61  ;;  %1840 = vmatmul.msk.bf16.gmra.mxu3 %vm177_vm0, %v2484_v62 }
  0x50   :  { %1836 = vmatmul.msk.bf16.gmra.mxu2 %vm177_vm0, %v2484_v62  ;;  %v2573_v62 = vor.u32 %v2054_v3, %v1869_v2 }
  0x51   :  { %669 = vmatpush.bf16.msra.mxu0 %v2487_v1 }
  0x52   :  { %569 = vmatpush.bf16.msra.mxu2 %v2573_v62  ;;  %705 = vmatpush.bf16.msrb.mxu3 %v2464_v55 }
  0x53   :  { %682 = vmatpush.bf16.msra.mxu1 %v2490_v4 }
  0x55   :  { %670 = vmatpush.bf16.msra.mxu0 %v2499_v9 }
  0x56   :  { %570 = vmatpush.bf16.msra.mxu2 %v2579_v12  ;;  %706 = vmatpush.bf16.msrb.mxu3 %v2503_v13 }
  0x57   :  { %683 = vmatpush.bf16.msra.mxu1 %v2506_v19 }
  0x59   :  { %671 = vmatpush.bf16.msra.mxu0 %v2514_v27 }
  0x5a   :  { %691 = vmatpush.bf16.msrb.mxu2 %v2466_v56  ;;  %707 = vmatpush.bf16.msrb.mxu3 %v2511_v25 }
  0x5b   :  { %684 = vmatpush.bf16.msra.mxu1 %v2520_v32 }
  0x5d   :  { %672 = vmatpush.bf16.msra.mxu0 %v2524_v36 }
  0x5e   :  { %692 = vmatpush.bf16.msrb.mxu2 %v2508_v20  ;;  %708 = vmatpush.bf16.msrb.mxu3 %v2540_v43 }
  0x5f   :  { %685 = vmatpush.bf16.msra.mxu1 %v2528_v37  ;;  %1841 = vmatmul.msk.bf16.gmra.mxu3 %vm177_vm0, %v2430_v15 }
  0x60   :  { %1837 = vmatmul.msk.bf16.gmra.mxu2 %vm177_vm0, %v2430_v15  ;;  %v107_v15 = vld [vmem:[%s2993_s3] sm:$0xf] }
  0x61   :  { %794 = vmatpush.bf16.msrb.mxu0 %v2437_v26  ;;  %v2646_v16 = vperm.slane %v107_v15, 0  ;;  %v2648_v17 = vperm.slane %v107_v15, 1  ;;  %v111_v10 = vperm.slane %v107_v15, 2  ;;  %v112_v11 = vperm.slane %v107_v15, 3 }
  0x62   :  { %693 = vmatpush.bf16.msrb.mxu2 %v2517_v28  ;;  %709 = vmatpush.bf16.msrb.mxu3 %v2546_v18 }
  0x63   :  { %807 = vmatpush.bf16.msrb.mxu1 %v2439_v30 }
  0x65   :  { %795 = vmatpush.bf16.msrb.mxu0 %v2448_v35 }
  0x66   :  { %694 = vmatpush.bf16.msrb.mxu2 %v2543_v50  ;;  %710 = vmatpush.bf16.msrb.mxu3 %v2564_v63 }
  0x67   :  { %808 = vmatpush.bf16.msrb.mxu1 %v2453_v39 }
  0x69   :  { %796 = vmatpush.bf16.msrb.mxu0 %v2458_v45 }
  0x6a   :  { %695 = vmatpush.bf16.msrb.mxu2 %v2549_v53  ;;  %711 = vmatpush.bf16.msrb.mxu3 %v2570_v8 }
  0x6b   :  { %809 = vmatpush.bf16.msrb.mxu1 %v2462_v49 }
  0x6d   :  { %797 = vmatpush.bf16.msrb.mxu0 %v2469_v57 }
  0x6e   :  { %696 = vmatpush.bf16.msrb.mxu2 %v2567_v5 }
  0x6f   :  { %810 = vmatpush.bf16.msrb.mxu1 %v2479_v61  ;;  %1842 = vmatmul.msk.bf16.gmra.mxu3 %vm177_vm0, %v2476_v60 }
  0x70   :  { %1838 = vmatmul.msk.bf16.gmra.mxu2 %vm177_vm0, %v2476_v60 }
  0x71   :  { %798 = vmatpush.bf16.msrb.mxu0 %v2487_v1 }
  0x72   :  { %697 = vmatpush.bf16.msrb.mxu2 %v2573_v62 }
  0x73   :  { %811 = vmatpush.bf16.msrb.mxu1 %v2490_v4 }
  0x75   :  { %799 = vmatpush.bf16.msrb.mxu0 %v2499_v9 }
  0x76   :  { %698 = vmatpush.bf16.msrb.mxu2 %v2579_v12 }
  0x77   :  { %812 = vmatpush.bf16.msrb.mxu1 %v2506_v19 }
  0x79   :  { %800 = vmatpush.bf16.msrb.mxu0 %v2514_v27 }
  0x7b   :  { %813 = vmatpush.bf16.msrb.mxu1 %v2520_v32 }
  0x7d   :  { %801 = vmatpush.bf16.msrb.mxu0 %v2524_v36 }
  0x7f   :  { %814 = vmatpush.bf16.msrb.mxu1 %v2528_v37  ;;  %584 = vmatmul.bf16.vlgmr.msra.gmra.mxu3 %v2370_v38 }
  0x80   :  { %571 = vmatmul.bf16.vlgmr.msra.gmra.mxu2 %v2370_v38  ;;  %833 = vmatpush.bf16.msra.mxu3 %v2455_v44 }
  0x81   :  { %820 = vmatpush.bf16.msra.mxu2 %v2466_v56 }
  0x84   :  { %834 = vmatpush.bf16.msra.mxu3 %v2464_v55 }
  0x85   :  { %821 = vmatpush.bf16.msra.mxu2 %v2508_v20 }
  0x88   :  { %835 = vmatpush.bf16.msra.mxu3 %v2503_v13 }
  0x89   :  { %822 = vmatpush.bf16.msra.mxu2 %v2517_v28 }
  0x8c   :  { %836 = vmatpush.bf16.msra.mxu3 %v2511_v25 }
  0x8d   :  { %823 = vmatpush.bf16.msra.mxu2 %v2543_v50 }
  0x90   :  { %837 = vmatpush.bf16.msra.mxu3 %v2540_v43 }
  0x91   :  { %824 = vmatpush.bf16.msra.mxu2 %v2549_v53 }
  0x94   :  { %838 = vmatpush.bf16.msra.mxu3 %v2546_v18 }
  0x95   :  { %825 = vmatpush.bf16.msra.mxu2 %v2567_v5 }
  0x98   :  { %839 = vmatpush.bf16.msra.mxu3 %v2564_v63 }
  0x99   :  { %826 = vmatpush.bf16.msra.mxu2 %v2573_v62 }
  0x9c   :  { %v199_v60 = vpop.f32.mrf.mxu0  ;;  %840 = vmatpush.bf16.msra.mxu3 %v2570_v8 }
  0x9d   :  { %827 = vmatpush.bf16.msra.mxu2 %v2579_v12 }
  0x9f   :  { %v228_v14 = vpop.f32.mrf.mxu1 }
  0xa2   :  { %v209_v21 = vpop.f32.mrf.mxu3 }
  0xa3   :  { %v2651_v22 = vadd.f32 %v209_v21, %v2646_v16  ;;  %v238_v23 = vpop.f32.mrf.mxu2 }
  0xa4   :  { %v2654_v24 = vadd.f32 %v238_v23, %v2648_v17  ;;  %v2656_v29 = vpop.f32.mrf.mxu0 }
  0xa5   :  { %2999 = vst [vmem:[#allocation17_spill] sm:$0xff] %v2651_v22 }
  0xa6   :  { %3000 = vst [vmem:[#allocation18_spill] sm:$0xff] %v2654_v24 }
  0xa7   :  { %v2658_v31 = vpop.f32.mrf.mxu1 }
  0xaa   :  { %v2660_v33 = vpop.f32.mrf.mxu3 }
  0xab   :  { %3001 = vst [vmem:[#allocation19_spill] sm:$0xff] %v2660_v33  ;;  %v2662_v34 = vpop.f32.mrf.mxu2 }
  0xac   :  { %3002 = vst [vmem:[#allocation20_spill] sm:$0xff] %v2662_v34  ;;  %v200_v34 = vadd.f32 %v199_v60, %v2646_v16 }
  0xad   :  { %v2664_v38 = vpop.f32.mrf.mxu0 }
  0xae   :  { %3003 = vst [vmem:[#allocation21_spill] sm:$0xff] %v2664_v38 }
  0xaf   :  { %v233_v40 = vpop.f32.mrf.mxu1 }
  0xb0   :  { %v2667_v41 = vadd.f32 %v233_v40, %v2648_v17 }
  0xb2   :  { %3004 = vst [vmem:[#allocation22_spill] sm:$0xff] %v2667_v41  ;;  %v214_v42 = vpop.f32.mrf.mxu3 }
  0xb3   :  { %v2670_v46 = vadd.f32 %v214_v42, %v2646_v16  ;;  %v243_v47 = vpop.f32.mrf.mxu2 }
  0xb4   :  { %v2673_v48 = vadd.f32 %v243_v47, %v2648_v17 }
  0xb5   :  { %3005 = vst [vmem:[#allocation23_spill] sm:$0xff] %v2670_v46  ;;  %v2675_v51 = vpop.f32.mrf.mxu0 }
  0xb6   :  { %3006 = vst [vmem:[#allocation24_spill] sm:$0xff] %v2673_v48 }
  0xb7   :  { %3007 = vst [vmem:[#allocation25_spill] sm:$0xff] %v2675_v51  ;;  %v2677_v52 = vpop.f32.mrf.mxu1 }
  0xb8   :  { %3008 = vst [vmem:[#allocation26_spill] sm:$0xff] %v2677_v52 }
  0xba   :  { %v2679_v54 = vpop.f32.mrf.mxu3 }
  0xbb   :  { %3009 = vst [vmem:[#allocation27_spill] sm:$0xff] %v2679_v54  ;;  %v2681_v58 = vpop.f32.mrf.mxu2 }
  0xbc   :  { %3010 = vst [vmem:[#allocation28_spill] sm:$0xff] %v2681_v58  ;;  %v229_v58 = vadd.f32 %v228_v14, %v2648_v17 }
  0xbd   :  { %v546_v59 = vpop.f32.mrf.mxu0 }
  0xbe   :  { %v589_v33 = vadd.f32 %v546_v59, %v200_v34 }
  0xbf   :  { %v559_v0 = vpop.f32.mrf.mxu1 }
  0xc0   :  { %v1971_v22 = vmul.f32 -1.442695, %v589_v33 }
  0xc2   :  { %v286_v2 = vpop.f32.mrf.mxu3 }
  0xc3   :  { %v257_v3 = vpop.f32.mrf.mxu2 }
  0xc5   :  { %v548_v6 = vpop.f32.mrf.mxu0 }
  0xc6   :  { %v590_v6 = vadd.f32 %v559_v0, %v229_v58 }
  0xc7   :  { %v561_v7 = vpop.f32.mrf.mxu1 }
  0xca   :  { %v288_v21 = vpop.f32.mrf.mxu3 }
  0xcb   :  { %v259_v23 = vpop.f32.mrf.mxu2  ;;  %v2683_v40 = vadd.f32 %v288_v21, %v112_v11 }
  0xcc   :  { %v2685_v42 = vadd.f32 %v259_v23, %v111_v10  ;;  %v1972_v23 = vmul.f32 -1.442695, %v590_v6 }
  0xce   :  { %2104 = vpow2.f32 %v1972_v23 }
  0xcf   :  { %2106 = vpow2.f32 %v1971_v22 }
  0xd2   :  { %v291_v47 = vpop.f32.mrf.mxu3 }
  0xd3   :  { %v262_v48 = vpop.f32.mrf.mxu2  ;;  %v2687_v46 = vadd.f32 %v291_v47, %v112_v11 }
  0xd4   :  { %v2689_v54 = vadd.f32 %v262_v48, %v111_v10  ;;  %v2105_v14 = vpop.eup %2104 }
  0xd5   :  { %3011 = vst [vmem:[#allocation29_spill] sm:$0xff] %v2687_v46  ;;  %v2107_v60 = vpop.eup %2106  ;;  %v615_v58 = vadd.f32 1.0, %v2105_v14 }
  0xd6   :  { %3012 = vst [vmem:[#allocation30_spill] sm:$0xff] %v2689_v54 }
  0xd7   :  { %2108 = vrcp.f32 %v615_v58  ;;  %vm621_vm1 = vweird.f32 %v615_v58  ;;  %v625_v41 = vand.u32 2147483647, %v615_v58 }
  0xd9   :  { %vm626_vm7 = vcmp.eq.f32.partialorder %v625_v41, 8.507059e+37 }
  0xda   :  { %v293_v7 = vpop.f32.mrf.mxu3 }
  0xdb   :  { %v264_v15 = vpop.f32.mrf.mxu2  ;;  %v2693_v24 = vadd.f32 %v293_v7, %v112_v11  ;;  %v596_v7 = vadd.f32 1.0, %v2107_v60 }
  0xdc   :  { %v2695_v21 = vadd.f32 %v264_v15, %v111_v10 }
  0xdd   :  { %3013 = vst [vmem:[#allocation31_spill] sm:$0xff] %v2693_v24  ;;  %2110 = vrcp.f32 %v596_v7  ;;  %vm602_vm3 = vweird.f32 %v596_v7 }
  0xde   :  { %3014 = vst [vmem:[#allocation32_spill] sm:$0xff] %v2695_v21 }
  0xe2   :  { %v296_v52 = vpop.f32.mrf.mxu3 }
  0xe3   :  { %v267_v47 = vpop.f32.mrf.mxu2  ;;  %v2697_v48 = vadd.f32 %v296_v52, %v112_v11  ;;  %v2109_v52 = vpop.eup %2108 }
  0xe4   :  { %v2699_v51 = vadd.f32 %v267_v47, %v111_v10  ;;  %v2111_v47 = vpop.eup %2110  ;;  %vm622_vm2 = vweird.f32 %v2109_v52 }
  0xe5   :  { %3015 = vst [vmem:[#allocation33_spill] sm:$0xff] %v2697_v48  ;;  %v598_v48 = vmul.f32 %v2111_v47, %v596_v7  ;;  %vm603_vm4 = vweird.f32 %v2111_v47  ;;  %vm623_vm5 = vmor %vm621_vm1, %vm622_vm2 }
  0xe6   :  { %3016 = vst [vmem:[#allocation34_spill] sm:$0xff] %v2699_v51  ;;  %v617_v51 = vmul.f32 %v2109_v52, %v615_v58  ;;  %vm604_vm6 = vmor %vm602_vm3, %vm603_vm4 }
  0xe8   :  { %v618_v21 = vsub.f32 1.0, %v617_v51 }
  0xea   :  { %v298_v0 = vpop.f32.mrf.mxu3 }
  0xeb   :  { %v269_v34 = vpop.f32.mrf.mxu2  ;;  %v2701_v59 = vadd.f32 %v298_v0, %v112_v11 }
  0xec   :  { %v2703_v15 = vadd.f32 %v269_v34, %v111_v10  ;;  %v599_v34 = vsub.f32 1.0, %v598_v48 }
  0xed   :  { %3017 = vst [vmem:[#allocation35_spill] sm:$0xff] %v2701_v59  ;;  %v287_v59 = vadd.f32 %v286_v2, %v112_v11 }
  0xee   :  { %3018 = vst [vmem:[#allocation36_spill] sm:$0xff] %v2703_v15  ;;  %v619_v15 = vmul.f32 %v2109_v52, %v618_v21  ;;  %v600_v54 = vmul.f32 %v2111_v47, %v599_v34 }
  0xf0   :  { %v620_v46 = vadd.f32 %v2109_v52, %v619_v15 }
  0xf2   :  { %v301_v33 = vpop.f32.mrf.mxu3  ;;  %v624_v2 = vsel %vm623_vm5, %v2109_v52, %v620_v46 }
  0xf3   :  { %v272_v6 = vpop.f32.mrf.mxu2  ;;  %v2705_v22 = vadd.f32 %v301_v33, %v112_v11  ;;  %v258_v33 = vadd.f32 %v257_v3, %v111_v10 }
  0xf4   :  { %v2707_v23 = vadd.f32 %v272_v6, %v111_v10 }
  0xf5   :  { %3019 = vst [vmem:[#allocation37_spill] sm:$0xff] %v2705_v22  ;;  %v627_v22 = vand.u32 2147483648, %v615_v58 }
  0xf6   :  { %3020 = vst [vmem:[#allocation38_spill] sm:$0xff] %v2707_v23 }
  0xf7   :  { %v628_v21 = vor.u32 1.1754944e-38, %v627_v22 }
  0xfa   :  { %v303_v14 = vpop.f32.mrf.mxu3 }
  0xfb   :  { %v274_v24 = vpop.f32.mrf.mxu2  ;;  %v2709_v0 = vadd.f32 %v303_v14, %v112_v11  ;;  %v608_v14 = vand.u32 2147483648, %v596_v7  ;;  %v629_v11 = vsel %vm626_vm7, %v628_v21, %v624_v2 }
  0xfc   :  { %v2711_v60 = vadd.f32 %v274_v24, %v111_v10  ;;  %v601_v24 = vadd.f32 %v2111_v47, %v600_v54 }
  0xfd   :  { %v609_v3 = vor.u32 1.1754944e-38, %v608_v14 }
  0xfe   :  { %3021 = vst [vmem:[#allocation39_spill] sm:$0xff] %v2711_v60  ;;  %v606_v60 = vand.u32 2147483647, %v596_v7  ;;  %v605_v10 = vsel %vm604_vm6, %v2111_v47, %v601_v24 }
 0x100   :  { %vm607_vm8 = vcmp.eq.f32.partialorder %v606_v60, 8.507059e+37 }
 0x102   :  { %v585_v6 = vpop.f32.mrf.mxu3 }
 0x103   :  { %v572_v23 = vpop.f32.mrf.mxu2  ;;  %v592_v51 = vadd.f32 %v585_v6, %v287_v59  ;;  %v610_v59 = vsel %vm607_vm8, %v609_v3, %v605_v10  ;;  %v202_v3 = vadd.f32 %v2656_v29, %v2646_v16  ;;  %v231_v10 = vadd.f32 %v2658_v31, %v2648_v17 }
 0x104   :  { %v591_v38 = vadd.f32 %v572_v23, %v258_v33  ;;  %v651_v33 = vmul.f32 0.0, %v629_v11 }
 0x105   :  { %v1973_v48 = vmul.f32 -1.442695, %v592_v51 }
 0x106   :  { %2112 = vtanh.f32 %v591_v38 }
 0x107   :  { %2114 = vpow2.f32 %v1973_v48 }
 0x10a   :  { %v587_v34 = vpop.f32.mrf.mxu3 }
 0x10b   :  { %v574_v15 = vpop.f32.mrf.mxu2 }
 0x10c   :  { %v2113_v58 = vpop.eup %2112 }
 0x10d   :  { %v2115_v23 = vpop.eup %2114  ;;  %v652_v6 = vmul.f32 %v2113_v58, %v610_v59 }
 0x10e   :  { %v635_v54 = vadd.f32 1.0, %v2115_v23 }
 0x10f   :  { %v2713_v7 = vadd.f32 %v652_v6, %v651_v33 }
 0x110   :  { %2116 = vrcp.f32 %v635_v54  ;;  %v647_v41 = vand.u32 2147483648, %v635_v54  ;;  %v645_v47 = vand.u32 2147483647, %v635_v54  ;;  %vm641_vm10 = vweird.f32 %v635_v54 }
 0x111   :  { %2118 = vtanh.f32 %v2713_v7 }
 0x112   :  { %v648_v51 = vor.u32 1.1754944e-38, %v647_v41  ;;  %vm646_vm12 = vcmp.eq.f32.partialorder %v645_v47, 8.507059e+37 }
 0x116   :  { %v2117_v22 = vpop.eup %2116 }
 0x117   :  { %v637_v38 = vmul.f32 %v2117_v22, %v635_v54  ;;  %vm642_vm9 = vweird.f32 %v2117_v22  ;;  %v2119_v24 = vpop.eup %2118 }
 0x118   :  { %vm643_vm11 = vmor %vm641_vm10, %vm642_vm9 }
 0x119   :  { %v638_v46 = vsub.f32 1.0, %v637_v38 }
 0x11b   :  { %v639_v52 = vmul.f32 %v2117_v22, %v638_v46 }
 0x11d   :  { %v640_v60 = vadd.f32 %v2117_v22, %v639_v52 }
 0x11f   :  { %v644_v14 = vsel %vm643_vm11, %v2117_v22, %v640_v60 }
 0x120   :  { %v649_v48 = vsel %vm646_vm12, %v648_v51, %v644_v14 }
 0x121   :  { %v2716_v21 = vmul.f32 %v2119_v24, %v649_v48 }
 0x123   :  { %3022 = vst [vmem:[#allocation40_spill] sm:$0xff] %v2716_v21  ;;  %v664_v2 = vpack.c.bf16 %v2716_v21, %v2716_v21 }
 0x125   :  { %673 = vmatmul.bf16.vlgmr.msra.gmra.mxu0 %v664_v2  ;;  %686 = vmatmul.bf16.vlgmr.msra.gmra.mxu1 %v664_v2 }
 0x126   :  { %699 = vmatmul.bf16.vlgmr.msrb.gmra.mxu2 %v664_v2  ;;  %712 = vmatmul.bf16.vlgmr.msrb.gmra.mxu3 %v664_v2 }
 0x127   :  { %923 = vmatpush.bf16.msra.mxu0 %v2437_v26  ;;  %936 = vmatpush.bf16.msra.mxu1 %v2439_v30 }
 0x128   :  { %949 = vmatpush.bf16.msrb.mxu2 %v2466_v56  ;;  %962 = vmatpush.bf16.msrb.mxu3 %v2455_v44 }
 0x12b   :  { %924 = vmatpush.bf16.msra.mxu0 %v2448_v35  ;;  %937 = vmatpush.bf16.msra.mxu1 %v2453_v39 }
 0x12c   :  { %950 = vmatpush.bf16.msrb.mxu2 %v2508_v20  ;;  %963 = vmatpush.bf16.msrb.mxu3 %v2464_v55 }
 0x12f   :  { %925 = vmatpush.bf16.msra.mxu0 %v2458_v45  ;;  %938 = vmatpush.bf16.msra.mxu1 %v2462_v49 }
 0x130   :  { %951 = vmatpush.bf16.msrb.mxu2 %v2517_v28  ;;  %964 = vmatpush.bf16.msrb.mxu3 %v2503_v13 }
 0x133   :  { %926 = vmatpush.bf16.msra.mxu0 %v2469_v57  ;;  %939 = vmatpush.bf16.msra.mxu1 %v2479_v61 }
 0x134   :  { %952 = vmatpush.bf16.msrb.mxu2 %v2543_v50  ;;  %965 = vmatpush.bf16.msrb.mxu3 %v2511_v25 }
 0x137   :  { %927 = vmatpush.bf16.msra.mxu0 %v2487_v1  ;;  %940 = vmatpush.bf16.msra.mxu1 %v2490_v4 }
 0x138   :  { %953 = vmatpush.bf16.msrb.mxu2 %v2549_v53  ;;  %966 = vmatpush.bf16.msrb.mxu3 %v2540_v43 }
 0x13b   :  { %928 = vmatpush.bf16.msra.mxu0 %v2499_v9  ;;  %941 = vmatpush.bf16.msra.mxu1 %v2506_v19 }
 0x13c   :  { %954 = vmatpush.bf16.msrb.mxu2 %v2567_v5  ;;  %967 = vmatpush.bf16.msrb.mxu3 %v2546_v18 }
 0x13f   :  { %929 = vmatpush.bf16.msra.mxu0 %v2514_v27  ;;  %942 = vmatpush.bf16.msra.mxu1 %v2520_v32 }
 0x140   :  { %955 = vmatpush.bf16.msrb.mxu2 %v2573_v62  ;;  %968 = vmatpush.bf16.msrb.mxu3 %v2564_v63 }
 0x143   :  { %930 = vmatpush.bf16.msra.mxu0 %v2524_v36  ;;  %943 = vmatpush.bf16.msra.mxu1 %v2528_v37 }
 0x144   :  { %956 = vmatpush.bf16.msrb.mxu2 %v2579_v12  ;;  %969 = vmatpush.bf16.msrb.mxu3 %v2570_v8 }
 0x1a2   :  { %v674_v11 = vpop.f32.mrf.mxu0  ;;  %v687_v34 = vpop.f32.mrf.mxu1 }
 0x1a3   :  { %v717_v15 = vadd.f32 %v674_v11, %v202_v3  ;;  %v718_v58 = vadd.f32 %v687_v34, %v231_v10 }
 0x1a5   :  { %v1974_v59 = vmul.f32 -1.442695, %v717_v15  ;;  %v1975_v23 = vmul.f32 -1.442695, %v718_v58 }
 0x1a7   :  { %2120 = vpow2.f32 %v1974_v59 }
 0x1a8   :  { %2122 = vpow2.f32 %v1975_v23 }
 0x1a9   :  { %v700_v33 = vpop.f32.mrf.mxu2  ;;  %v713_v6 = vpop.f32.mrf.mxu3 }
 0x1aa   :  { %v720_v54 = vadd.f32 %v713_v6, %v2683_v40  ;;  %v676_v22 = vpop.f32.mrf.mxu0  ;;  %v689_v38 = vpop.f32.mrf.mxu1  ;;  %v719_v48 = vadd.f32 %v700_v33, %v2685_v42 }
 0x1ac   :  { %v1976_v46 = vmul.f32 -1.442695, %v720_v54 }
 0x1ad   :  { %v2121_v41 = vpop.eup %2120 }
 0x1ae   :  { %v2123_v29 = vpop.eup %2122  ;;  %v724_v52 = vadd.f32 1.0, %v2121_v41  ;;  %2124 = vpow2.f32 %v1976_v46 }
 0x1af   :  { %v743_v31 = vadd.f32 1.0, %v2123_v29 }
 0x1b0   :  { %2126 = vrcp.f32 %v724_v52  ;;  %v736_v34 = vand.u32 2147483648, %v724_v52  ;;  %v734_v59 = vand.u32 2147483647, %v724_v52  ;;  %vm730_vm15 = vweird.f32 %v724_v52 }
 0x1b1   :  { %2128 = vrcp.f32 %v743_v31  ;;  %v702_v47 = vpop.f32.mrf.mxu2  ;;  %v715_v60 = vpop.f32.mrf.mxu3  ;;  %v755_v15 = vand.u32 2147483648, %v743_v31  ;;  %v753_v6 = vand.u32 2147483647, %v743_v31  ;;  %vm749_vm0 = vweird.f32 %v743_v31 }
 0x1b2   :  { %v737_v42 = vor.u32 1.1754944e-38, %v736_v34  ;;  %vm735_vm3 = vcmp.eq.f32.partialorder %v734_v59, 8.507059e+37 }
 0x1b3   :  { %v756_v46 = vor.u32 1.1754944e-38, %v755_v15  ;;  %vm754_vm4 = vcmp.eq.f32.partialorder %v753_v6, 8.507059e+37 }
 0x1b4   :  { %v2125_v51 = vpop.eup %2124 }
 0x1b5   :  { %v763_v14 = vadd.f32 1.0, %v2125_v51 }
 0x1b6   :  { %v2127_v24 = vpop.eup %2126 }
 0x1b7   :  { %v2129_v2 = vpop.eup %2128  ;;  %v726_v3 = vmul.f32 %v2127_v24, %v724_v52  ;;  %2130 = vrcp.f32 %v763_v14  ;;  %vm731_vm13 = vweird.f32 %v2127_v24  ;;  %vm769_vm6 = vweird.f32 %v763_v14 }
 0x1b8   :  { %v745_v40 = vmul.f32 %v2129_v2, %v743_v31  ;;  %2132 = vtanh.f32 %v719_v48  ;;  %vm750_vm14 = vweird.f32 %v2129_v2  ;;  %vm732_vm1 = vmor %vm730_vm15, %vm731_vm13 }
 0x1b9   :  { %v727_v10 = vsub.f32 1.0, %v726_v3  ;;  %vm751_vm2 = vmor %vm749_vm0, %vm750_vm14 }
 0x1ba   :  { %v746_v11 = vsub.f32 1.0, %v745_v40 }
 0x1bb   :  { %v728_v58 = vmul.f32 %v2127_v24, %v727_v10 }
 0x1bc   :  { %v747_v23 = vmul.f32 %v2129_v2, %v746_v11  ;;  %v775_v11 = vand.u32 2147483648, %v763_v14 }
 0x1bd   :  { %v2131_v54 = vpop.eup %2130  ;;  %v729_v22 = vadd.f32 %v2127_v24, %v728_v58 }
 0x1be   :  { %v748_v33 = vadd.f32 %v2129_v2, %v747_v23  ;;  %v765_v38 = vmul.f32 %v2131_v54, %v763_v14  ;;  %v2133_v29 = vpop.eup %2132  ;;  %vm770_vm5 = vweird.f32 %v2131_v54  ;;  %v776_v15 = vor.u32 1.1754944e-38, %v775_v11 }
 0x1bf   :  { %v733_v41 = vsel %vm732_vm1, %v2127_v24, %v729_v22  ;;  %v773_v24 = vand.u32 2147483647, %v763_v14  ;;  %vm771_vm7 = vmor %vm769_vm6, %vm770_vm5  ;;  %v3023_v14 = vld [vmem:[#allocation21_spill] sm:$0xff] }
 0x1c0   :  { %v738_v47 = vsel %vm735_vm3, %v737_v42, %v733_v41  ;;  %v752_v60 = vsel %vm751_vm2, %v2129_v2, %v748_v33  ;;  %v766_v51 = vsub.f32 1.0, %v765_v38  ;;  %v205_v23 = vadd.f32 %v3023_v14, %v2646_v16  ;;  %v3024_v42 = vld [vmem:[#allocation22_spill] sm:$0xff] }
 0x1c1   :  { %v757_v48 = vsel %vm754_vm4, %v756_v46, %v752_v60  ;;  %v780_v3 = vmul.f32 %v2133_v29, %v738_v47  ;;  %vm774_vm8 = vcmp.eq.f32.partialorder %v773_v24, 8.507059e+37  ;;  %v3025_v47 = vld [vmem:[#allocation29_spill] sm:$0xff] }
 0x1c2   :  { %v779_v40 = vmul.f32 %v757_v48, %v2713_v7  ;;  %v767_v10 = vmul.f32 %v2131_v54, %v766_v51 }
 0x1c4   :  { %v2759_v52 = vadd.f32 %v780_v3, %v779_v40  ;;  %v768_v31 = vadd.f32 %v2131_v54, %v767_v10 }
 0x1c6   :  { %2134 = vtanh.f32 %v2759_v52  ;;  %v772_v34 = vsel %vm771_vm7, %v2131_v54, %v768_v31 }
 0x1c7   :  { %v777_v58 = vsel %vm774_vm8, %v776_v15, %v772_v34 }
 0x1cc   :  { %v2135_v2 = vpop.eup %2134 }
 0x1cd   :  { %v2762_v59 = vmul.f32 %v2135_v2, %v777_v58 }
 0x1cf   :  { %v793_v7 = vpack.c.bf16 %v2762_v59, %v2762_v59 }
 0x1d1   :  { %802 = vmatmul.bf16.vlgmr.msrb.gmra.mxu0 %v793_v7  ;;  %815 = vmatmul.bf16.vlgmr.msrb.gmra.mxu1 %v793_v7 }
 0x1d2   :  { %828 = vmatmul.bf16.vlgmr.msra.gmra.mxu2 %v793_v7  ;;  %841 = vmatmul.bf16.vlgmr.msra.gmra.mxu3 %v793_v7  ;;  %v3026_v7 = vld [vmem:[#allocation30_spill] sm:$0xff] }
 0x1d3   :  { %1052 = vmatpush.bf16.msrb.mxu0 %v2437_v26  ;;  %1065 = vmatpush.bf16.msrb.mxu1 %v2439_v30 }
 0x1d4   :  { %1078 = vmatpush.bf16.msra.mxu2 %v2466_v56  ;;  %1091 = vmatpush.bf16.msra.mxu3 %v2455_v44 }
 0x1d7   :  { %1053 = vmatpush.bf16.msrb.mxu0 %v2448_v35  ;;  %1066 = vmatpush.bf16.msrb.mxu1 %v2453_v39 }
 0x1d8   :  { %1079 = vmatpush.bf16.msra.mxu2 %v2508_v20  ;;  %1092 = vmatpush.bf16.msra.mxu3 %v2464_v55 }
 0x1db   :  { %1054 = vmatpush.bf16.msrb.mxu0 %v2458_v45  ;;  %1067 = vmatpush.bf16.msrb.mxu1 %v2462_v49 }
 0x1dc   :  { %1080 = vmatpush.bf16.msra.mxu2 %v2517_v28  ;;  %1093 = vmatpush.bf16.msra.mxu3 %v2503_v13 }
 0x1df   :  { %1055 = vmatpush.bf16.msrb.mxu0 %v2469_v57  ;;  %1068 = vmatpush.bf16.msrb.mxu1 %v2479_v61 }
 0x1e0   :  { %1081 = vmatpush.bf16.msra.mxu2 %v2543_v50  ;;  %1094 = vmatpush.bf16.msra.mxu3 %v2511_v25 }
 0x1e3   :  { %1056 = vmatpush.bf16.msrb.mxu0 %v2487_v1  ;;  %1069 = vmatpush.bf16.msrb.mxu1 %v2490_v4 }
 0x1e4   :  { %1082 = vmatpush.bf16.msra.mxu2 %v2549_v53  ;;  %1095 = vmatpush.bf16.msra.mxu3 %v2540_v43 }
 0x1e7   :  { %1057 = vmatpush.bf16.msrb.mxu0 %v2499_v9  ;;  %1070 = vmatpush.bf16.msrb.mxu1 %v2506_v19 }
 0x1e8   :  { %1083 = vmatpush.bf16.msra.mxu2 %v2567_v5  ;;  %1096 = vmatpush.bf16.msra.mxu3 %v2546_v18 }
 0x1eb   :  { %1058 = vmatpush.bf16.msrb.mxu0 %v2514_v27  ;;  %1071 = vmatpush.bf16.msrb.mxu1 %v2520_v32 }
 0x1ec   :  { %1084 = vmatpush.bf16.msra.mxu2 %v2573_v62  ;;  %1097 = vmatpush.bf16.msra.mxu3 %v2564_v63 }
 0x1ef   :  { %1059 = vmatpush.bf16.msrb.mxu0 %v2524_v36  ;;  %1072 = vmatpush.bf16.msrb.mxu1 %v2528_v37 }
 0x1f0   :  { %1085 = vmatpush.bf16.msra.mxu2 %v2579_v12  ;;  %1098 = vmatpush.bf16.msra.mxu3 %v2570_v8 }
 0x24e   :  { %v803_v6 = vpop.f32.mrf.mxu0  ;;  %v816_v54 = vpop.f32.mrf.mxu1 }
 0x24f   :  { %v846_v22 = vadd.f32 %v803_v6, %v205_v23  ;;  %v847_v33 = vadd.f32 %v816_v54, %v3024_v42 }
 0x251   :  { %v1977_v38 = vmul.f32 -1.442695, %v846_v22  ;;  %v1978_v46 = vmul.f32 -1.442695, %v847_v33 }
 0x253   :  { %2136 = vpow2.f32 %v1977_v38 }
 0x254   :  { %2138 = vpow2.f32 %v1978_v46 }
 0x255   :  { %v829_v41 = vpop.f32.mrf.mxu2  ;;  %v842_v29 = vpop.f32.mrf.mxu3 }
 0x256   :  { %v849_v60 = vadd.f32 %v842_v29, %v3025_v47  ;;  %v805_v51 = vpop.f32.mrf.mxu0  ;;  %v818_v48 = vpop.f32.mrf.mxu1  ;;  %v848_v14 = vadd.f32 %v829_v41, %v3026_v7 }
 0x258   :  { %v1979_v3 = vmul.f32 -1.442695, %v849_v60 }
 0x259   :  { %v2137_v40 = vpop.eup %2136 }
 0x25a   :  { %v2139_v10 = vpop.eup %2138  ;;  %v853_v31 = vadd.f32 1.0, %v2137_v40  ;;  %2140 = vpow2.f32 %v1979_v3 }
 0x25b   :  { %v872_v11 = vadd.f32 1.0, %v2139_v10 }
 0x25c   :  { %2142 = vrcp.f32 %v853_v31  ;;  %v865_v33 = vand.u32 2147483648, %v853_v31  ;;  %v863_v29 = vand.u32 2147483647, %v853_v31  ;;  %vm859_vm11 = vweird.f32 %v853_v31 }
 0x25d   :  { %2144 = vrcp.f32 %v872_v11  ;;  %v831_v24 = vpop.f32.mrf.mxu2  ;;  %v844_v34 = vpop.f32.mrf.mxu3  ;;  %v884_v38 = vand.u32 2147483648, %v872_v11  ;;  %v882_v60 = vand.u32 2147483647, %v872_v11  ;;  %vm878_vm12 = vweird.f32 %v872_v11 }
 0x25e   :  { %v866_v41 = vor.u32 1.1754944e-38, %v865_v33  ;;  %vm864_vm15 = vcmp.eq.f32.partialorder %v863_v29, 8.507059e+37 }
 0x25f   :  { %v885_v10 = vor.u32 1.1754944e-38, %v884_v38  ;;  %vm883_vm0 = vcmp.eq.f32.partialorder %v882_v60, 8.507059e+37 }
 0x260   :  { %v2141_v15 = vpop.eup %2140 }
 0x261   :  { %v892_v2 = vadd.f32 1.0, %v2141_v15 }
 0x262   :  { %v2143_v58 = vpop.eup %2142 }
 0x263   :  { %v2145_v23 = vpop.eup %2144  ;;  %v855_v6 = vmul.f32 %v2143_v58, %v853_v31  ;;  %2146 = vrcp.f32 %v892_v2  ;;  %vm860_vm9 = vweird.f32 %v2143_v58  ;;  %v904_v33 = vand.u32 2147483648, %v892_v2 }
 0x264   :  { %v874_v54 = vmul.f32 %v2145_v23, %v872_v11  ;;  %2148 = vtanh.f32 %v848_v14  ;;  %vm879_vm10 = vweird.f32 %v2145_v23  ;;  %vm861_vm13 = vmor %vm859_vm11, %vm860_vm9  ;;  %vm898_vm2 = vweird.f32 %v892_v2 }
 0x265   :  { %v856_v22 = vsub.f32 1.0, %v855_v6  ;;  %vm880_vm14 = vmor %vm878_vm12, %vm879_vm10 }
 0x266   :  { %v875_v42 = vsub.f32 1.0, %v874_v54 }
 0x267   :  { %v857_v46 = vmul.f32 %v2143_v58, %v856_v22 }
 0x268   :  { %v876_v47 = vmul.f32 %v2145_v23, %v875_v42 }
 0x269   :  { %v2147_v51 = vpop.eup %2146  ;;  %v858_v48 = vadd.f32 %v2143_v58, %v857_v46  ;;  %v905_v46 = vor.u32 1.1754944e-38, %v904_v33 }
 0x26a   :  { %v877_v3 = vadd.f32 %v2145_v23, %v876_v47  ;;  %v894_v40 = vmul.f32 %v2147_v51, %v892_v2  ;;  %v2149_v34 = vpop.eup %2148  ;;  %vm899_vm1 = vweird.f32 %v2147_v51 }
 0x26b   :  { %v862_v24 = vsel %vm861_vm13, %v2143_v58, %v858_v48  ;;  %v902_v58 = vand.u32 2147483647, %v892_v2  ;;  %vm900_vm3 = vmor %vm898_vm2, %vm899_vm1  ;;  %v3027_v2 = vld [vmem:[#allocation25_spill] sm:$0xff] }
 0x26c   :  { %v867_v15 = vsel %vm864_vm15, %v866_v41, %v862_v24  ;;  %v881_v7 = vsel %vm880_vm14, %v2145_v23, %v877_v3  ;;  %v895_v14 = vsub.f32 1.0, %v894_v40  ;;  %v207_v60 = vadd.f32 %v3027_v2, %v2646_v16 }
 0x26d   :  { %v886_v6 = vsel %vm883_vm0, %v885_v10, %v881_v7  ;;  %v909_v54 = vmul.f32 %v2149_v34, %v867_v15  ;;  %vm903_vm4 = vcmp.eq.f32.partialorder %v902_v58, 8.507059e+37 }
 0x26e   :  { %v908_v22 = vmul.f32 %v886_v6, %v2759_v52  ;;  %v896_v42 = vmul.f32 %v2147_v51, %v895_v14  ;;  %v3029_v14 = vld [vmem:[#allocation31_spill] sm:$0xff] }
 0x270   :  { %v2804_v31 = vadd.f32 %v909_v54, %v908_v22  ;;  %v897_v11 = vadd.f32 %v2147_v51, %v896_v42 }
 0x272   :  { %2150 = vtanh.f32 %v2804_v31  ;;  %v901_v38 = vsel %vm900_vm3, %v2147_v51, %v897_v11  ;;  %v3028_v51 = vld [vmem:[#allocation26_spill] sm:$0xff] }
 0x273   :  { %v906_v29 = vsel %vm903_vm4, %v905_v46, %v901_v38  ;;  %v236_v48 = vadd.f32 %v3028_v51, %v2648_v17 }
 0x278   :  { %v2151_v23 = vpop.eup %2150 }
 0x279   :  { %v2807_v47 = vmul.f32 %v2151_v23, %v906_v29 }
 0x27b   :  { %v922_v52 = vpack.c.bf16 %v2807_v47, %v2807_v47 }
 0x27d   :  { %931 = vmatmul.bf16.vlgmr.msra.gmra.mxu0 %v922_v52  ;;  %944 = vmatmul.bf16.vlgmr.msra.gmra.mxu1 %v922_v52 }
 0x27e   :  { %957 = vmatmul.bf16.vlgmr.msrb.gmra.mxu2 %v922_v52  ;;  %970 = vmatmul.bf16.vlgmr.msrb.gmra.mxu3 %v922_v52 }
 0x27f   :  { %1181 = vmatpush.bf16.msra.mxu0 %v2437_v26  ;;  %1194 = vmatpush.bf16.msra.mxu1 %v2439_v30 }
 0x280   :  { %1207 = vmatpush.bf16.msrb.mxu2 %v2466_v56  ;;  %1220 = vmatpush.bf16.msrb.mxu3 %v2455_v44 }
 0x283   :  { %1182 = vmatpush.bf16.msra.mxu0 %v2448_v35  ;;  %1195 = vmatpush.bf16.msra.mxu1 %v2453_v39 }
 0x284   :  { %1208 = vmatpush.bf16.msrb.mxu2 %v2508_v20  ;;  %1221 = vmatpush.bf16.msrb.mxu3 %v2464_v55 }
 0x287   :  { %1183 = vmatpush.bf16.msra.mxu0 %v2458_v45  ;;  %1196 = vmatpush.bf16.msra.mxu1 %v2462_v49 }
 0x288   :  { %1209 = vmatpush.bf16.msrb.mxu2 %v2517_v28  ;;  %1222 = vmatpush.bf16.msrb.mxu3 %v2503_v13 }
 0x28b   :  { %1184 = vmatpush.bf16.msra.mxu0 %v2469_v57  ;;  %1197 = vmatpush.bf16.msra.mxu1 %v2479_v61 }
 0x28c   :  { %1210 = vmatpush.bf16.msrb.mxu2 %v2543_v50  ;;  %1223 = vmatpush.bf16.msrb.mxu3 %v2511_v25 }
 0x28f   :  { %1185 = vmatpush.bf16.msra.mxu0 %v2487_v1  ;;  %1198 = vmatpush.bf16.msra.mxu1 %v2490_v4 }
 0x290   :  { %1211 = vmatpush.bf16.msrb.mxu2 %v2549_v53  ;;  %1224 = vmatpush.bf16.msrb.mxu3 %v2540_v43 }
 0x293   :  { %1186 = vmatpush.bf16.msra.mxu0 %v2499_v9  ;;  %1199 = vmatpush.bf16.msra.mxu1 %v2506_v19 }
 0x294   :  { %1212 = vmatpush.bf16.msrb.mxu2 %v2567_v5  ;;  %1225 = vmatpush.bf16.msrb.mxu3 %v2546_v18 }
 0x297   :  { %1187 = vmatpush.bf16.msra.mxu0 %v2514_v27  ;;  %1200 = vmatpush.bf16.msra.mxu1 %v2520_v32 }
 0x298   :  { %1213 = vmatpush.bf16.msrb.mxu2 %v2573_v62  ;;  %1226 = vmatpush.bf16.msrb.mxu3 %v2564_v63 }
 0x29b   :  { %1188 = vmatpush.bf16.msra.mxu0 %v2524_v36  ;;  %1201 = vmatpush.bf16.msra.mxu1 %v2528_v37 }
 0x29c   :  { %1214 = vmatpush.bf16.msrb.mxu2 %v2579_v12  ;;  %1227 = vmatpush.bf16.msrb.mxu3 %v2570_v8 }
 0x2fa   :  { %v932_v41 = vpop.f32.mrf.mxu0  ;;  %v945_v3 = vpop.f32.mrf.mxu1 }
 0x2fb   :  { %v975_v40 = vadd.f32 %v932_v41, %v207_v60  ;;  %v976_v10 = vadd.f32 %v945_v3, %v236_v48  ;;  %v3030_v60 = vld [vmem:[#allocation32_spill] sm:$0xff] }
 0x2fd   :  { %v1980_v24 = vmul.f32 -1.442695, %v975_v40  ;;  %v1981_v34 = vmul.f32 -1.442695, %v976_v10 }
 0x2ff   :  { %2152 = vpow2.f32 %v1980_v24 }
 0x300   :  { %2154 = vpow2.f32 %v1981_v34 }
 0x301   :  { %v958_v15 = vpop.f32.mrf.mxu2  ;;  %v971_v7 = vpop.f32.mrf.mxu3 }
 0x302   :  { %v978_v6 = vadd.f32 %v971_v7, %v3029_v14  ;;  %v934_v54 = vpop.f32.mrf.mxu0  ;;  %v947_v22 = vpop.f32.mrf.mxu1  ;;  %v977_v51 = vadd.f32 %v958_v15, %v3030_v60 }
 0x304   :  { %v1982_v42 = vmul.f32 -1.442695, %v978_v6 }
 0x305   :  { %v2153_v11 = vpop.eup %2152 }
 0x306   :  { %v2155_v33 = vpop.eup %2154  ;;  %v982_v58 = vadd.f32 1.0, %v2153_v11  ;;  %2156 = vpow2.f32 %v1982_v42 }
 0x307   :  { %v1001_v38 = vadd.f32 1.0, %v2155_v33 }
 0x308   :  { %2158 = vrcp.f32 %v982_v58  ;;  %v994_v24 = vand.u32 2147483648, %v982_v58  ;;  %v992_v14 = vand.u32 2147483647, %v982_v58  ;;  %vm988_vm7 = vweird.f32 %v982_v58 }
 0x309   :  { %2160 = vrcp.f32 %v1001_v38  ;;  %v960_v46 = vpop.f32.mrf.mxu2  ;;  %v973_v23 = vpop.f32.mrf.mxu3  ;;  %v1013_v34 = vand.u32 2147483648, %v1001_v38  ;;  %v1011_v54 = vand.u32 2147483647, %v1001_v38  ;;  %vm1007_vm8 = vweird.f32 %v1001_v38 }
 0x30a   :  { %v995_v15 = vor.u32 1.1754944e-38, %v994_v24  ;;  %vm993_vm11 = vcmp.eq.f32.partialorder %v992_v14, 8.507059e+37 }
 0x30b   :  { %v1014_v46 = vor.u32 1.1754944e-38, %v1013_v34  ;;  %vm1012_vm12 = vcmp.eq.f32.partialorder %v1011_v54, 8.507059e+37 }
 0x30c   :  { %v2157_v29 = vpop.eup %2156 }
 0x30d   :  { %v1021_v52 = vadd.f32 1.0, %v2157_v29 }
 0x30e   :  { %v2159_v2 = vpop.eup %2158 }
 0x30f   :  { %v2161_v48 = vpop.eup %2160  ;;  %v984_v41 = vmul.f32 %v2159_v2, %v982_v58  ;;  %2162 = vrcp.f32 %v1021_v52  ;;  %vm989_vm5 = vweird.f32 %v2159_v2  ;;  %v1033_v24 = vand.u32 2147483648, %v1021_v52 }
 0x310   :  { %v1003_v3 = vmul.f32 %v2161_v48, %v1001_v38  ;;  %2164 = vtanh.f32 %v977_v51  ;;  %vm1008_vm6 = vweird.f32 %v2161_v48  ;;  %vm990_vm9 = vmor %vm988_vm7, %vm989_vm5  ;;  %vm1027_vm14 = vweird.f32 %v1021_v52 }
 0x311   :  { %v985_v40 = vsub.f32 1.0, %v984_v41  ;;  %vm1009_vm10 = vmor %vm1007_vm8, %vm1008_vm6  ;;  %v1034_v14 = vor.u32 1.1754944e-38, %v1033_v24 }
 0x312   :  { %v1004_v10 = vsub.f32 1.0, %v1003_v3 }
 0x313   :  { %v986_v7 = vmul.f32 %v2159_v2, %v985_v40 }
 0x314   :  { %v1005_v6 = vmul.f32 %v2161_v48, %v1004_v10 }
 0x315   :  { %v2163_v22 = vpop.eup %2162  ;;  %v987_v42 = vadd.f32 %v2159_v2, %v986_v7 }
 0x316   :  { %v1006_v11 = vadd.f32 %v2161_v48, %v1005_v6  ;;  %v1023_v33 = vmul.f32 %v2163_v22, %v1021_v52  ;;  %v2165_v29 = vpop.eup %2164  ;;  %vm1028_vm13 = vweird.f32 %v2163_v22 }
 0x317   :  { %v991_v23 = vsel %vm990_vm9, %v2159_v2, %v987_v42  ;;  %v1031_v2 = vand.u32 2147483647, %v1021_v52  ;;  %vm1029_vm15 = vmor %vm1027_vm14, %vm1028_vm13  ;;  %v3031_v42 = vld [vmem:[#allocation17_spill] sm:$0xff] }
 0x318   :  { %v996_v60 = vsel %vm993_vm11, %v995_v15, %v991_v23  ;;  %v1010_v51 = vsel %vm1009_vm10, %v2161_v48, %v1006_v11  ;;  %v1024_v41 = vsub.f32 1.0, %v1023_v33  ;;  %v3032_v11 = vld [vmem:[#allocation18_spill] sm:$0xff] }
 0x319   :  { %v1015_v3 = vsel %vm1012_vm12, %v1014_v46, %v1010_v51  ;;  %v1038_v40 = vmul.f32 %v2165_v29, %v996_v60  ;;  %vm1032_vm0 = vcmp.eq.f32.partialorder %v1031_v2, 8.507059e+37  ;;  %v3033_v51 = vld [vmem:[#allocation33_spill] sm:$0xff] }
 0x31a   :  { %v1037_v10 = vmul.f32 %v1015_v3, %v2804_v31  ;;  %v1025_v7 = vmul.f32 %v2163_v22, %v1024_v41 }
 0x31c   :  { %v2850_v58 = vadd.f32 %v1038_v40, %v1037_v10  ;;  %v1026_v38 = vadd.f32 %v2163_v22, %v1025_v7 }
 0x31e   :  { %2166 = vtanh.f32 %v2850_v58  ;;  %v1030_v34 = vsel %vm1029_vm15, %v2163_v22, %v1026_v38 }
 0x31f   :  { %v1035_v6 = vsel %vm1032_vm0, %v1034_v14, %v1030_v34 }
 0x324   :  { %v2167_v48 = vpop.eup %2166 }
 0x325   :  { %v2853_v54 = vmul.f32 %v2167_v48, %v1035_v6 }
 0x327   :  { %v1051_v31 = vpack.c.bf16 %v2853_v54, %v2853_v54 }
 0x329   :  { %1060 = vmatmul.bf16.vlgmr.msrb.gmra.mxu0 %v1051_v31  ;;  %1073 = vmatmul.bf16.vlgmr.msrb.gmra.mxu1 %v1051_v31 }
 0x32a   :  { %1086 = vmatmul.bf16.vlgmr.msra.gmra.mxu2 %v1051_v31  ;;  %1099 = vmatmul.bf16.vlgmr.msra.gmra.mxu3 %v1051_v31 }
 0x32b   :  { %1310 = vmatpush.bf16.msrb.mxu0 %v2437_v26  ;;  %1323 = vmatpush.bf16.msrb.mxu1 %v2439_v30 }
 0x32c   :  { %1336 = vmatpush.bf16.msra.mxu2 %v2466_v56  ;;  %1349 = vmatpush.bf16.msra.mxu3 %v2455_v44 }
 0x32f   :  { %1311 = vmatpush.bf16.msrb.mxu0 %v2448_v35  ;;  %1324 = vmatpush.bf16.msrb.mxu1 %v2453_v39 }
 0x330   :  { %1337 = vmatpush.bf16.msra.mxu2 %v2508_v20  ;;  %1350 = vmatpush.bf16.msra.mxu3 %v2464_v55 }
 0x333   :  { %1312 = vmatpush.bf16.msrb.mxu0 %v2458_v45  ;;  %1325 = vmatpush.bf16.msrb.mxu1 %v2462_v49 }
 0x334   :  { %1338 = vmatpush.bf16.msra.mxu2 %v2517_v28  ;;  %1351 = vmatpush.bf16.msra.mxu3 %v2503_v13 }
 0x337   :  { %1313 = vmatpush.bf16.msrb.mxu0 %v2469_v57  ;;  %1326 = vmatpush.bf16.msrb.mxu1 %v2479_v61 }
 0x338   :  { %1339 = vmatpush.bf16.msra.mxu2 %v2543_v50  ;;  %1352 = vmatpush.bf16.msra.mxu3 %v2511_v25 }
 0x33b   :  { %1314 = vmatpush.bf16.msrb.mxu0 %v2487_v1  ;;  %1327 = vmatpush.bf16.msrb.mxu1 %v2490_v4 }
 0x33c   :  { %1340 = vmatpush.bf16.msra.mxu2 %v2549_v53  ;;  %1353 = vmatpush.bf16.msra.mxu3 %v2540_v43 }
 0x33f   :  { %1315 = vmatpush.bf16.msrb.mxu0 %v2499_v9  ;;  %1328 = vmatpush.bf16.msrb.mxu1 %v2506_v19 }
 0x340   :  { %1341 = vmatpush.bf16.msra.mxu2 %v2567_v5  ;;  %1354 = vmatpush.bf16.msra.mxu3 %v2546_v18 }
 0x343   :  { %1316 = vmatpush.bf16.msrb.mxu0 %v2514_v27  ;;  %1329 = vmatpush.bf16.msrb.mxu1 %v2520_v32 }
 0x344   :  { %1342 = vmatpush.bf16.msra.mxu2 %v2573_v62  ;;  %1355 = vmatpush.bf16.msra.mxu3 %v2564_v63 }
 0x347   :  { %1317 = vmatpush.bf16.msrb.mxu0 %v2524_v36  ;;  %1330 = vmatpush.bf16.msrb.mxu1 %v2528_v37 }
 0x348   :  { %1343 = vmatpush.bf16.msra.mxu2 %v2579_v12  ;;  %1356 = vmatpush.bf16.msra.mxu3 %v2570_v8 }
 0x3a6   :  { %v1061_v52 = vpop.f32.mrf.mxu0  ;;  %v1074_v22 = vpop.f32.mrf.mxu1 }
 0x3a7   :  { %v1104_v15 = vadd.f32 %v1061_v52, %v3031_v42  ;;  %v1105_v33 = vadd.f32 %v1074_v22, %v3032_v11  ;;  %v3034_v52 = vld [vmem:[#allocation34_spill] sm:$0xff] }
 0x3a9   :  { %v1983_v46 = vmul.f32 -1.442695, %v1104_v15  ;;  %v1984_v23 = vmul.f32 -1.442695, %v1105_v33 }
 0x3ab   :  { %2168 = vpow2.f32 %v1983_v46 }
 0x3ac   :  { %2170 = vpow2.f32 %v1984_v23 }
 0x3ad   :  { %v1087_v29 = vpop.f32.mrf.mxu2  ;;  %v1100_v60 = vpop.f32.mrf.mxu3 }
 0x3ae   :  { %v1107_v41 = vadd.f32 %v1100_v60, %v3033_v51  ;;  %v1063_v3 = vpop.f32.mrf.mxu0  ;;  %v1076_v40 = vpop.f32.mrf.mxu1  ;;  %v1106_v22 = vadd.f32 %v1087_v29, %v3034_v52 }
 0x3b0   :  { %v1985_v10 = vmul.f32 -1.442695, %v1107_v41 }
 0x3b1   :  { %v2169_v7 = vpop.eup %2168 }
 0x3b2   :  { %v2171_v38 = vpop.eup %2170  ;;  %v1111_v24 = vadd.f32 1.0, %v2169_v7  ;;  %2172 = vpow2.f32 %v1985_v10 }
 0x3b3   :  { %v1130_v2 = vadd.f32 1.0, %v2171_v38 }
 0x3b4   :  { %2174 = vrcp.f32 %v1111_v24  ;;  %v1123_v23 = vand.u32 2147483648, %v1111_v24  ;;  %v1121_v41 = vand.u32 2147483647, %v1111_v24  ;;  %vm1117_vm3 = vweird.f32 %v1111_v24 }
 0x3b5   :  { %2176 = vrcp.f32 %v1130_v2  ;;  %v1089_v34 = vpop.f32.mrf.mxu2  ;;  %v1102_v14 = vpop.f32.mrf.mxu3  ;;  %v1142_v60 = vand.u32 2147483648, %v1130_v2  ;;  %v1140_v40 = vand.u32 2147483647, %v1130_v2  ;;  %vm1136_vm4 = vweird.f32 %v1130_v2 }
 0x3b6   :  { %v1124_v29 = vor.u32 1.1754944e-38, %v1123_v23  ;;  %vm1122_vm7 = vcmp.eq.f32.partialorder %v1121_v41, 8.507059e+37 }
 0x3b7   :  { %v1143_v14 = vor.u32 1.1754944e-38, %v1142_v60  ;;  %vm1141_vm8 = vcmp.eq.f32.partialorder %v1140_v40, 8.507059e+37 }
 0x3b8   :  { %v2173_v48 = vpop.eup %2172 }
 0x3b9   :  { %v1150_v6 = vadd.f32 1.0, %v2173_v48 }
 0x3ba   :  { %v2175_v31 = vpop.eup %2174 }
 0x3bb   :  { %v2177_v42 = vpop.eup %2176  ;;  %v1113_v15 = vmul.f32 %v2175_v31, %v1111_v24  ;;  %2178 = vrcp.f32 %v1150_v6  ;;  %vm1118_vm1 = vweird.f32 %v2175_v31  ;;  %v1162_v23 = vand.u32 2147483648, %v1150_v6 }
 0x3bc   :  { %v1132_v11 = vmul.f32 %v2177_v42, %v1130_v2  ;;  %2180 = vtanh.f32 %v1106_v22  ;;  %vm1137_vm2 = vweird.f32 %v2177_v42  ;;  %vm1119_vm5 = vmor %vm1117_vm3, %vm1118_vm1  ;;  %vm1156_vm10 = vweird.f32 %v1150_v6 }
 0x3bd   :  { %v1114_v33 = vsub.f32 1.0, %v1113_v15  ;;  %vm1138_vm6 = vmor %vm1136_vm4, %vm1137_vm2  ;;  %v1163_v41 = vor.u32 1.1754944e-38, %v1162_v23 }
 0x3be   :  { %v1133_v46 = vsub.f32 1.0, %v1132_v11 }
 0x3bf   :  { %v1115_v51 = vmul.f32 %v2175_v31, %v1114_v33 }
 0x3c0   :  { %v1134_v3 = vmul.f32 %v2177_v42, %v1133_v46 }
 0x3c1   :  { %v2179_v10 = vpop.eup %2178  ;;  %v1116_v7 = vadd.f32 %v2175_v31, %v1115_v51 }
 0x3c2   :  { %v1135_v38 = vadd.f32 %v2177_v42, %v1134_v3  ;;  %v1152_v34 = vmul.f32 %v2179_v10, %v1150_v6  ;;  %v2181_v52 = vpop.eup %2180  ;;  %vm1157_vm9 = vweird.f32 %v2179_v10 }
 0x3c3   :  { %v1120_v48 = vsel %vm1119_vm5, %v2175_v31, %v1116_v7  ;;  %v1160_v31 = vand.u32 2147483647, %v1150_v6  ;;  %vm1158_vm11 = vmor %vm1156_vm10, %vm1157_vm9 }
 0x3c4   :  { %v1125_v22 = vsel %vm1122_vm7, %v1124_v29, %v1120_v48  ;;  %v1139_v15 = vsel %vm1138_vm6, %v2177_v42, %v1135_v38  ;;  %v1153_v11 = vsub.f32 1.0, %v1152_v34 }
 0x3c5   :  { %v1144_v33 = vsel %vm1141_vm8, %v1143_v14, %v1139_v15  ;;  %v1167_v46 = vmul.f32 %v2181_v52, %v1125_v22  ;;  %vm1161_vm12 = vcmp.eq.f32.partialorder %v1160_v31, 8.507059e+37 }
 0x3c6   :  { %v1166_v21 = vmul.f32 %v1144_v33, %v2850_v58  ;;  %v1154_v51 = vmul.f32 %v2179_v10, %v1153_v11 }
 0x3c8   :  { %v2894_v24 = vadd.f32 %v1167_v46, %v1166_v21  ;;  %v1155_v2 = vadd.f32 %v2179_v10, %v1154_v51 }
 0x3ca   :  { %2182 = vtanh.f32 %v2894_v24  ;;  %v1159_v60 = vsel %vm1158_vm11, %v2179_v10, %v1155_v2 }
 0x3cb   :  { %v1164_v3 = vsel %vm1161_vm12, %v1163_v41, %v1159_v60 }
 0x3d0   :  { %v2183_v42 = vpop.eup %2182 }
 0x3d1   :  { %v2897_v40 = vmul.f32 %v2183_v42, %v1164_v3 }
 0x3d3   :  { %v1180_v58 = vpack.c.bf16 %v2897_v40, %v2897_v40 }
 0x3d5   :  { %1189 = vmatmul.bf16.vlgmr.msra.gmra.mxu0 %v1180_v58  ;;  %1202 = vmatmul.bf16.vlgmr.msra.gmra.mxu1 %v1180_v58 }
 0x3d6   :  { %1215 = vmatmul.bf16.vlgmr.msrb.gmra.mxu2 %v1180_v58  ;;  %1228 = vmatmul.bf16.vlgmr.msrb.gmra.mxu3 %v1180_v58 }
 0x3d7   :  { %1439 = vmatpush.bf16.msra.mxu0 %v2437_v26  ;;  %1452 = vmatpush.bf16.msra.mxu1 %v2439_v30  ;;  %v3035_v26 = vld [vmem:[#allocation19_spill] sm:$0xff] }
 0x3d8   :  { %1465 = vmatpush.bf16.msrb.mxu2 %v2466_v56  ;;  %1478 = vmatpush.bf16.msrb.mxu3 %v2455_v44  ;;  %v212_v30 = vadd.f32 %v3035_v26, %v2646_v16 }
 0x3db   :  { %1440 = vmatpush.bf16.msra.mxu0 %v2448_v35  ;;  %1453 = vmatpush.bf16.msra.mxu1 %v2453_v39  ;;  %v3036_v35 = vld [vmem:[#allocation20_spill] sm:$0xff] }
 0x3dc   :  { %1466 = vmatpush.bf16.msrb.mxu2 %v2508_v20  ;;  %1479 = vmatpush.bf16.msrb.mxu3 %v2464_v55  ;;  %v241_v39 = vadd.f32 %v3036_v35, %v2648_v17 }
 0x3df   :  { %1441 = vmatpush.bf16.msra.mxu0 %v2458_v45  ;;  %1454 = vmatpush.bf16.msra.mxu1 %v2462_v49 }
 0x3e0   :  { %1467 = vmatpush.bf16.msrb.mxu2 %v2517_v28  ;;  %1480 = vmatpush.bf16.msrb.mxu3 %v2503_v13 }
 0x3e3   :  { %1442 = vmatpush.bf16.msra.mxu0 %v2469_v57  ;;  %1455 = vmatpush.bf16.msra.mxu1 %v2479_v61 }
 0x3e4   :  { %1468 = vmatpush.bf16.msrb.mxu2 %v2543_v50  ;;  %1481 = vmatpush.bf16.msrb.mxu3 %v2511_v25 }
 0x3e7   :  { %1443 = vmatpush.bf16.msra.mxu0 %v2487_v1  ;;  %1456 = vmatpush.bf16.msra.mxu1 %v2490_v4  ;;  %v3037_v4 = vld [vmem:[#allocation35_spill] sm:$0xff] }
 0x3e8   :  { %1469 = vmatpush.bf16.msrb.mxu2 %v2549_v53  ;;  %1482 = vmatpush.bf16.msrb.mxu3 %v2540_v43  ;;  %v3038_v53 = vld [vmem:[#allocation36_spill] sm:$0xff] }
 0x3eb   :  { %1444 = vmatpush.bf16.msra.mxu0 %v2499_v9  ;;  %1457 = vmatpush.bf16.msra.mxu1 %v2506_v19 }
 0x3ec   :  { %1470 = vmatpush.bf16.msrb.mxu2 %v2567_v5  ;;  %1483 = vmatpush.bf16.msrb.mxu3 %v2546_v18 }
 0x3ef   :  { %1445 = vmatpush.bf16.msra.mxu0 %v2514_v27  ;;  %1458 = vmatpush.bf16.msra.mxu1 %v2520_v32 }
 0x3f0   :  { %1471 = vmatpush.bf16.msrb.mxu2 %v2573_v62  ;;  %1484 = vmatpush.bf16.msrb.mxu3 %v2564_v63 }
 0x3f3   :  { %1446 = vmatpush.bf16.msra.mxu0 %v2524_v36  ;;  %1459 = vmatpush.bf16.msra.mxu1 %v2528_v37 }
 0x3f4   :  { %1472 = vmatpush.bf16.msrb.mxu2 %v2579_v12  ;;  %1485 = vmatpush.bf16.msrb.mxu3 %v2570_v8 }
 0x452   :  { %v1190_v44 = vpop.f32.mrf.mxu0  ;;  %v1203_v45 = vpop.f32.mrf.mxu1 }
 0x453   :  { %v1233_v49 = vadd.f32 %v1190_v44, %v212_v30  ;;  %v1234_v55 = vadd.f32 %v1203_v45, %v241_v39 }
 0x455   :  { %v1986_v56 = vmul.f32 -1.442695, %v1233_v49  ;;  %v1987_v57 = vmul.f32 -1.442695, %v1234_v55 }
 0x457   :  { %2184 = vpow2.f32 %v1986_v56 }
 0x458   :  { %2186 = vpow2.f32 %v1987_v57  ;;  %v3039_v57 = vld [vmem:[#allocation23_spill] sm:$0xff] }
 0x459   :  { %v1216_v61 = vpop.f32.mrf.mxu2  ;;  %v1229_v1 = vpop.f32.mrf.mxu3 }
 0x45a   :  { %v1236_v9 = vadd.f32 %v1229_v1, %v3037_v4  ;;  %v1192_v13 = vpop.f32.mrf.mxu0  ;;  %v1205_v19 = vpop.f32.mrf.mxu1  ;;  %v1235_v63 = vadd.f32 %v1216_v61, %v3038_v53  ;;  %v3040_v1 = vld [vmem:[#allocation24_spill] sm:$0xff] }
 0x45c   :  { %v1988_v20 = vmul.f32 -1.442695, %v1236_v9 }
 0x45d   :  { %v2185_v25 = vpop.eup %2184 }
 0x45e   :  { %v2187_v27 = vpop.eup %2186  ;;  %v1240_v28 = vadd.f32 1.0, %v2185_v25  ;;  %2188 = vpow2.f32 %v1988_v20  ;;  %v3041_v25 = vld [vmem:[#allocation37_spill] sm:$0xff] }
 0x45f   :  { %v1259_v32 = vadd.f32 1.0, %v2187_v27 }
 0x460   :  { %2190 = vrcp.f32 %v1240_v28  ;;  %v1252_v6 = vand.u32 2147483648, %v1240_v28  ;;  %v1250_v29 = vand.u32 2147483647, %v1240_v28  ;;  %vm1246_vm15 = vweird.f32 %v1240_v28 }
 0x461   :  { %2192 = vrcp.f32 %v1259_v32  ;;  %v1218_v36 = vpop.f32.mrf.mxu2  ;;  %v1231_v37 = vpop.f32.mrf.mxu3  ;;  %v1271_v10 = vand.u32 2147483648, %v1259_v32  ;;  %v1269_v34 = vand.u32 2147483647, %v1259_v32  ;;  %vm1265_vm0 = vweird.f32 %v1259_v32 }
 0x462   :  { %v1253_v52 = vor.u32 1.1754944e-38, %v1252_v6  ;;  %vm1251_vm3 = vcmp.eq.f32.partialorder %v1250_v29, 8.507059e+37 }
 0x463   :  { %v1272_v11 = vor.u32 1.1754944e-38, %v1271_v10  ;;  %vm1270_vm4 = vcmp.eq.f32.partialorder %v1269_v34, 8.507059e+37 }
 0x464   :  { %v2189_v43 = vpop.eup %2188 }
 0x465   :  { %v1279_v50 = vadd.f32 1.0, %v2189_v43 }
 0x466   :  { %v2191_v18 = vpop.eup %2190 }
 0x467   :  { %v2193_v5 = vpop.eup %2192  ;;  %v1242_v8 = vmul.f32 %v2191_v18, %v1240_v28  ;;  %2194 = vrcp.f32 %v1279_v50  ;;  %vm1247_vm13 = vweird.f32 %v2191_v18  ;;  %v1291_v26 = vand.u32 2147483648, %v1279_v50 }
 0x468   :  { %v1261_v62 = vmul.f32 %v2193_v5, %v1259_v32  ;;  %2196 = vtanh.f32 %v1235_v63  ;;  %vm1266_vm14 = vweird.f32 %v2193_v5  ;;  %vm1248_vm1 = vmor %vm1246_vm15, %vm1247_vm13  ;;  %vm1285_vm6 = vweird.f32 %v1279_v50 }
 0x469   :  { %v1243_v12 = vsub.f32 1.0, %v1242_v8  ;;  %vm1267_vm2 = vmor %vm1265_vm0, %vm1266_vm14  ;;  %v1289_v30 = vand.u32 2147483647, %v1279_v50  ;;  %v1292_v39 = vor.u32 1.1754944e-38, %v1291_v26 }
 0x46a   :  { %v1262_v21 = vsub.f32 1.0, %v1261_v62 }
 0x46b   :  { %v1244_v7 = vmul.f32 %v2191_v18, %v1243_v12  ;;  %vm1290_vm8 = vcmp.eq.f32.partialorder %v1289_v30, 8.507059e+37  ;;  %v3042_v12 = vld [vmem:[#allocation38_spill] sm:$0xff] }
 0x46c   :  { %v1263_v38 = vmul.f32 %v2193_v5, %v1262_v21 }
 0x46d   :  { %v2195_v14 = vpop.eup %2194  ;;  %v1245_v48 = vadd.f32 %v2191_v18, %v1244_v7 }
 0x46e   :  { %v1264_v22 = vadd.f32 %v2193_v5, %v1263_v38  ;;  %v1281_v15 = vmul.f32 %v2195_v14, %v1279_v50  ;;  %v2197_v46 = vpop.eup %2196  ;;  %vm1286_vm5 = vweird.f32 %v2195_v14 }
 0x46f   :  { %v1249_v33 = vsel %vm1248_vm1, %v2191_v18, %v1245_v48  ;;  %vm1287_vm7 = vmor %vm1285_vm6, %vm1286_vm5 }
 0x470   :  { %v1254_v51 = vsel %vm1251_vm3, %v1253_v52, %v1249_v33  ;;  %v1268_v2 = vsel %vm1267_vm2, %v2193_v5, %v1264_v22  ;;  %v1282_v23 = vsub.f32 1.0, %v1281_v15 }
 0x471   :  { %v1273_v31 = vsel %vm1270_vm4, %v1272_v11, %v1268_v2  ;;  %v1296_v60 = vmul.f32 %v2197_v46, %v1254_v51 }
 0x472   :  { %v1295_v41 = vmul.f32 %v1273_v31, %v2894_v24  ;;  %v1283_v42 = vmul.f32 %v2195_v14, %v1282_v23 }
 0x474   :  { %v2940_v3 = vadd.f32 %v1296_v60, %v1295_v41  ;;  %v1284_v58 = vadd.f32 %v2195_v14, %v1283_v42 }
 0x476   :  { %2198 = vtanh.f32 %v2940_v3  ;;  %v1288_v35 = vsel %vm1287_vm7, %v2195_v14, %v1284_v58 }
 0x477   :  { %v1293_v45 = vsel %vm1290_vm8, %v1292_v39, %v1288_v35 }
 0x47c   :  { %v2199_v44 = vpop.eup %2198 }
 0x47d   :  { %v2943_v49 = vmul.f32 %v2199_v44, %v1293_v45 }
 0x47f   :  { %v1309_v24 = vpack.c.bf16 %v2943_v49, %v2943_v49 }
 0x481   :  { %1318 = vmatmul.bf16.vlgmr.msrb.gmra.mxu0 %v1309_v24  ;;  %1331 = vmatmul.bf16.vlgmr.msrb.gmra.mxu1 %v1309_v24 }
 0x482   :  { %1344 = vmatmul.bf16.vlgmr.msra.gmra.mxu2 %v1309_v24  ;;  %1357 = vmatmul.bf16.vlgmr.msra.gmra.mxu3 %v1309_v24 }
 0x4fe   :  { %v1319_v55 = vpop.f32.mrf.mxu0  ;;  %v1332_v56 = vpop.f32.mrf.mxu1 }
 0x4ff   :  { %v1362_v61 = vadd.f32 %v1319_v55, %v3039_v57  ;;  %v1363_v4 = vadd.f32 %v1332_v56, %v3040_v1 }
 0x501   :  { %v1989_v9 = vmul.f32 -1.442695, %v1362_v61  ;;  %v1990_v13 = vmul.f32 -1.442695, %v1363_v4 }
 0x503   :  { %2200 = vpow2.f32 %v1989_v9  ;;  %v3043_v9 = vld [vmem:[#allocation27_spill] sm:$0xff] }
 0x504   :  { %2202 = vpow2.f32 %v1990_v13  ;;  %v217_v13 = vadd.f32 %v3043_v9, %v2646_v16 }
 0x505   :  { %v1345_v19 = vpop.f32.mrf.mxu2  ;;  %v1358_v20 = vpop.f32.mrf.mxu3 }
 0x506   :  { %v1365_v27 = vadd.f32 %v1358_v20, %v3041_v25  ;;  %v1321_v28 = vpop.f32.mrf.mxu0  ;;  %v1334_v32 = vpop.f32.mrf.mxu1  ;;  %v1364_v21 = vadd.f32 %v1345_v19, %v3042_v12  ;;  %v3044_v19 = vld [vmem:[#allocation28_spill] sm:$0xff] }
 0x507   :  { %v246_v20 = vadd.f32 %v3044_v19, %v2648_v17 }
 0x508   :  { %v1991_v36 = vmul.f32 -1.442695, %v1365_v27 }
 0x509   :  { %v2201_v37 = vpop.eup %2200 }
 0x50a   :  { %v2203_v43 = vpop.eup %2202  ;;  %v1369_v50 = vadd.f32 1.0, %v2201_v37  ;;  %2204 = vpow2.f32 %v1991_v36 }
 0x50b   :  { %v1388_v18 = vadd.f32 1.0, %v2203_v43 }
 0x50c   :  { %2206 = vrcp.f32 %v1369_v50  ;;  %v1381_v34 = vand.u32 2147483648, %v1369_v50  ;;  %v1379_v52 = vand.u32 2147483647, %v1369_v50  ;;  %vm1375_vm11 = vweird.f32 %v1369_v50 }
 0x50d   :  { %2208 = vrcp.f32 %v1388_v18  ;;  %v1347_v53 = vpop.f32.mrf.mxu2  ;;  %v1360_v63 = vpop.f32.mrf.mxu3  ;;  %v1400_v14 = vand.u32 2147483648, %v1388_v18  ;;  %v1398_v15 = vand.u32 2147483647, %v1388_v18  ;;  %vm1394_vm12 = vweird.f32 %v1388_v18 }
 0x50e   :  { %v1382_v46 = vor.u32 1.1754944e-38, %v1381_v34  ;;  %vm1380_vm15 = vcmp.eq.f32.partialorder %v1379_v52, 8.507059e+37 }
 0x50f   :  { %v1401_v23 = vor.u32 1.1754944e-38, %v1400_v14  ;;  %vm1399_vm0 = vcmp.eq.f32.partialorder %v1398_v15, 8.507059e+37 }
 0x510   :  { %v2205_v5 = vpop.eup %2204 }
 0x511   :  { %v1408_v8 = vadd.f32 1.0, %v2205_v5 }
 0x512   :  { %v2207_v62 = vpop.eup %2206 }
 0x513   :  { %v2209_v6 = vpop.eup %2208  ;;  %v1371_v10 = vmul.f32 %v2207_v62, %v1369_v50  ;;  %2210 = vrcp.f32 %v1408_v8  ;;  %vm1376_vm9 = vweird.f32 %v2207_v62  ;;  %v1420_v24 = vand.u32 2147483648, %v1408_v8 }
 0x514   :  { %v1390_v7 = vmul.f32 %v2209_v6, %v1388_v18  ;;  %2212 = vtanh.f32 %v1364_v21  ;;  %vm1395_vm10 = vweird.f32 %v2209_v6  ;;  %vm1377_vm13 = vmor %vm1375_vm11, %vm1376_vm9  ;;  %vm1414_vm2 = vweird.f32 %v1408_v8 }
 0x515   :  { %v1372_v29 = vsub.f32 1.0, %v1371_v10  ;;  %vm1396_vm14 = vmor %vm1394_vm12, %vm1395_vm10  ;;  %v1418_v55 = vand.u32 2147483647, %v1408_v8  ;;  %v1421_v57 = vor.u32 1.1754944e-38, %v1420_v24 }
 0x516   :  { %v1391_v38 = vsub.f32 1.0, %v1390_v7 }
 0x517   :  { %v1373_v48 = vmul.f32 %v2207_v62, %v1372_v29  ;;  %vm1419_vm4 = vcmp.eq.f32.partialorder %v1418_v55, 8.507059e+37  ;;  %v3045_v29 = vld [vmem:[#allocation39_spill] sm:$0xff] }
 0x518   :  { %v1392_v22 = vmul.f32 %v2209_v6, %v1391_v38 }
 0x519   :  { %v2211_v11 = vpop.eup %2210  ;;  %v1374_v33 = vadd.f32 %v2207_v62, %v1373_v48 }
 0x51a   :  { %v1393_v51 = vadd.f32 %v2209_v6, %v1392_v22  ;;  %v1410_v2 = vmul.f32 %v2211_v11, %v1408_v8  ;;  %v2213_v60 = vpop.eup %2212  ;;  %vm1415_vm1 = vweird.f32 %v2211_v11 }
 0x51b   :  { %v1378_v31 = vsel %vm1377_vm13, %v2207_v62, %v1374_v33  ;;  %vm1416_vm3 = vmor %vm1414_vm2, %vm1415_vm1  ;;  %vm1576_vm1 = vcmask 523264  }
 0x51c   :  { %v1383_v41 = vsel %vm1380_vm15, %v1382_v46, %v1378_v31  ;;  %v1397_v42 = vsel %vm1396_vm14, %v2209_v6, %v1393_v51  ;;  %v1411_v58 = vsub.f32 1.0, %v1410_v2 }
 0x51d   :  { %v1402_v26 = vsel %vm1399_vm0, %v1401_v23, %v1397_v42  ;;  %v1425_v30 = vmul.f32 %v2213_v60, %v1383_v41 }
 0x51e   :  { %v1424_v35 = vmul.f32 %v1402_v26, %v2940_v3  ;;  %v1412_v39 = vmul.f32 %v2211_v11, %v1411_v58 }
 0x520   :  { %v2952_v44 = vadd.f32 %v1425_v30, %v1424_v35  ;;  %v1413_v45 = vadd.f32 %v2211_v11, %v1412_v39 }
 0x522   :  { %2214 = vtanh.f32 %v2952_v44  ;;  %v1417_v56 = vsel %vm1416_vm3, %v2211_v11, %v1413_v45 }
 0x523   :  { %v1422_v1 = vsel %vm1419_vm4, %v1421_v57, %v1417_v56 }
 0x528   :  { %v2215_v61 = vpop.eup %2214 }
 0x529   :  { %v2955_v4 = vmul.f32 %v2215_v61, %v1422_v1 }
 0x52b   :  { %v1438_v3 = vpack.c.bf16 %v2955_v4, %v2955_v4 }
 0x52d   :  { %1447 = vmatmul.bf16.vlgmr.msra.gmra.mxu0 %v1438_v3  ;;  %1460 = vmatmul.bf16.vlgmr.msra.gmra.mxu1 %v1438_v3 }
 0x52e   :  { %1473 = vmatmul.bf16.vlgmr.msrb.gmra.mxu2 %v1438_v3  ;;  %1486 = vmatmul.bf16.vlgmr.msrb.gmra.mxu3 %v1438_v3 }
 0x5aa   :  { %v1448_v25 = vpop.f32.mrf.mxu0  ;;  %v1461_v27 = vpop.f32.mrf.mxu1 }
 0x5ab   :  { %v1491_v28 = vadd.f32 %v1448_v25, %v217_v13  ;;  %v1492_v32 = vadd.f32 %v1461_v27, %v246_v20  ;;  %v3046_v27 = vld [vmem:[#allocation40_spill] sm:$0xff] }
 0x5ad   :  { %v1992_v36 = vmul.f32 -1.442695, %v1491_v28  ;;  %v1993_v37 = vmul.f32 -1.442695, %v1492_v32  ;;  %v1561_v28 = vld [vmem:[#allocation10 + $0x8] sm:$0xff]  ;;  %v2083_v32 = vld [vmem:[#allocation9 + $0x20] sm:$0xff] }
 0x5af   :  { %2216 = vpow2.f32 %v1992_v36  ;;  %v1565_v36 = vld [vmem:[#allocation10 + $0x28] sm:$0xff] }
 0x5b0   :  { %2218 = vpow2.f32 %v1993_v37  ;;  %v2082_v37 = vld [vmem:[#allocation9 + $0x18] sm:$0xff] }
 0x5b1   :  { %v1474_v43 = vpop.f32.mrf.mxu2  ;;  %v1487_v50 = vpop.f32.mrf.mxu3 }
 0x5b2   :  { %v1494_v18 = vadd.f32 %v1487_v50, %v2709_v0  ;;  %v1450_v53 = vpop.f32.mrf.mxu0  ;;  %v1463_v63 = vpop.f32.mrf.mxu1  ;;  %v1493_v38 = vadd.f32 %v1474_v43, %v3045_v29  ;;  %v1566_v43 = vld [vmem:[#allocation10 + $0x30] sm:$0xff]  ;;  %v1567_v50 = vld [vmem:[#allocation10 + $0x38] sm:$0xff] }
 0x5b3   :  { %v2080_v53 = vld [vmem:[#allocation9 + $0x8] sm:$0xff]  ;;  %v2079_v63 = vld [vmem:[#allocation9] sm:$0xff] }
 0x5b4   :  { %v1994_v5 = vmul.f32 -1.442695, %v1494_v18  ;;  %v2081_v18 = vld [vmem:[#allocation9 + $0x10] sm:$0xff] }
 0x5b5   :  { %v2217_v8 = vpop.eup %2216 }
 0x5b6   :  { %v2219_v16 = vpop.eup %2218  ;;  %v1498_v62 = vadd.f32 1.0, %v2217_v8  ;;  %2220 = vpow2.f32 %v1994_v5 }
 0x5b7   :  { %v1517_v17 = vadd.f32 1.0, %v2219_v16 }
 0x5b8   :  { %2222 = vrcp.f32 %v1498_v62  ;;  %v1510_v22 = vand.u32 2147483648, %v1498_v62  ;;  %v1508_v33 = vand.u32 2147483647, %v1498_v62  ;;  %vm1504_vm7 = vweird.f32 %v1498_v62 }
 0x5b9   :  { %2224 = vrcp.f32 %v1517_v17  ;;  %v1476_v12 = vpop.f32.mrf.mxu2  ;;  %v1489_v21 = vpop.f32.mrf.mxu3  ;;  %v1529_v15 = vand.u32 2147483648, %v1517_v17  ;;  %v1527_v51 = vand.u32 2147483647, %v1517_v17  ;;  %vm1523_vm8 = vweird.f32 %v1517_v17 }
 0x5ba   :  { %v1511_v31 = vor.u32 1.1754944e-38, %v1510_v22  ;;  %vm1509_vm11 = vcmp.eq.f32.partialorder %v1508_v33, 8.507059e+37 }
 0x5bb   :  { %v1530_v42 = vor.u32 1.1754944e-38, %v1529_v15  ;;  %vm1528_vm12 = vcmp.eq.f32.partialorder %v1527_v51, 8.507059e+37 }
 0x5bc   :  { %v2221_v6 = vpop.eup %2220 }
 0x5bd   :  { %v1537_v10 = vadd.f32 1.0, %v2221_v6 }
 0x5be   :  { %v2223_v7 = vpop.eup %2222 }
 0x5bf   :  { %v2225_v34 = vpop.eup %2224  ;;  %v1500_v14 = vmul.f32 %v2223_v7, %v1498_v62  ;;  %2226 = vrcp.f32 %v1537_v10  ;;  %vm1505_vm5 = vweird.f32 %v2223_v7  ;;  %v1549_v1 = vand.u32 2147483648, %v1537_v10 }
 0x5c0   :  { %v1519_v0 = vmul.f32 %v2225_v34, %v1517_v17  ;;  %2228 = vtanh.f32 %v1493_v38  ;;  %vm1524_vm6 = vweird.f32 %v2225_v34  ;;  %vm1506_vm9 = vmor %vm1504_vm7, %vm1505_vm5  ;;  %vm1543_vm14 = vweird.f32 %v1537_v10 }
 0x5c1   :  { %v1501_v48 = vsub.f32 1.0, %v1500_v14  ;;  %vm1525_vm10 = vmor %vm1523_vm8, %vm1524_vm6  ;;  %v1547_v3 = vand.u32 2147483647, %v1537_v10  ;;  %v1550_v13 = vor.u32 1.1754944e-38, %v1549_v1 }
 0x5c2   :  { %v1520_v52 = vsub.f32 1.0, %v1519_v0 }
 0x5c3   :  { %v1502_v11 = vmul.f32 %v2223_v7, %v1501_v48  ;;  %vm1548_vm0 = vcmp.eq.f32.partialorder %v1547_v3, 8.507059e+37 }
 0x5c4   :  { %v1521_v46 = vmul.f32 %v2225_v34, %v1520_v52 }
 0x5c5   :  { %v2227_v2 = vpop.eup %2226  ;;  %v1503_v23 = vadd.f32 %v2223_v7, %v1502_v11 }
 0x5c6   :  { %v1522_v60 = vadd.f32 %v2225_v34, %v1521_v46  ;;  %v1539_v41 = vmul.f32 %v2227_v2, %v1537_v10  ;;  %v2229_v26 = vpop.eup %2228  ;;  %vm1544_vm13 = vweird.f32 %v2227_v2 }
 0x5c7   :  { %v1507_v58 = vsel %vm1506_vm9, %v2223_v7, %v1503_v23  ;;  %vm1545_vm15 = vmor %vm1543_vm14, %vm1544_vm13 }
 0x5c8   :  { %v1512_v30 = vsel %vm1509_vm11, %v1511_v31, %v1507_v58  ;;  %v1526_v35 = vsel %vm1525_vm10, %v2225_v34, %v1522_v60  ;;  %v1540_v39 = vsub.f32 1.0, %v1539_v41  ;;  %v2103_v34 = vld [vmem:[%s2995_s5] ss:$0 sm:$0xff]  ;;  %s2371_s5 = smov [#allocation12]  }
 0x5c9   :  { %v1531_v45 = vsel %vm1528_vm12, %v1530_v42, %v1526_v35  ;;  %v1554_v24 = vmul.f32 %v2229_v26, %v1512_v30  ;;  %s1755_s10 = sshll.u32 %s2371_s5, 4  ;;  %s1756_s10 = int_to_ptr.vmem [resolvable:$true] %s1755_s10 }
 0x5ca   :  { %v1553_v55 = vmul.f32 %v1531_v45, %v2952_v44  ;;  %v1541_v56 = vmul.f32 %v2227_v2, %v1540_v39  ;;  %v1560_v44 = vld [vmem:[#allocation10] sm:$0xff] }
 0x5cc   :  { %v1555_v57 = vadd.f32 %v1554_v24, %v1553_v55  ;;  %v1542_v61 = vadd.f32 %v2227_v2, %v1541_v56 }
 0x5ce   :  { %2230 = vtanh.f32 %v1555_v57  ;;  %v1546_v9 = vsel %vm1545_vm15, %v2227_v2, %v1542_v61 }
 0x5cf   :  { %v1551_v20 = vsel %vm1548_vm0, %v1550_v13, %v1546_v9 }
 0x5d4   :  { %v2231_v19 = vpop.eup %2230 }
 0x5d5   :  { %v1557_v25 = vmul.f32 %v2231_v19, %v1551_v20 }
 0x5d7   :  { %1609 = vmatpush.msrb.mxu0 %v1557_v25 }
 0x5d9   :  { %1610 = vmatpush.msrb.mxu0 %v2955_v4  ;;  %v1562_v4 = vld [vmem:[#allocation10 + $0x10] sm:$0xff] }
 0x5db   :  { %1611 = vmatpush.msrb.mxu0 %v2943_v49  ;;  %v1563_v49 = vld [vmem:[#allocation10 + $0x18] sm:$0xff] }
 0x5dd   :  { %1612 = vmatpush.msrb.mxu0 %v2897_v40  ;;  %v1564_v40 = vld [vmem:[#allocation10 + $0x20] sm:$0xff] }
 0x5df   :  { %1613 = vmatpush.msrb.mxu0 %v2853_v54  ;;  %v2086_v54 = vld [vmem:[#allocation9 + $0x38] sm:$0xff] }
 0x5e0   :  { %1714 = vmatpush.bf16.msrb.mxu1 %v2086_v54 }
 0x5e1   :  { %1614 = vmatpush.msrb.mxu0 %v2807_v47  ;;  %v2085_v47 = vld [vmem:[#allocation9 + $0x30] sm:$0xff] }
 0x5e3   :  { %1615 = vmatpush.msrb.mxu0 %v2762_v59  ;;  %v2084_v59 = vld [vmem:[#allocation9 + $0x28] sm:$0xff] }
 0x5e4   :  { %1715 = vmatpush.bf16.msrb.mxu1 %v2085_v47 }
 0x5e5   :  { %1616 = vmatpush.msrb.mxu0 %v3046_v27 }
 0x5e6   :  { %1995 = vmatmul.msk.f32.vlgmr.msrb.gmra.mxu0 %vm1576_vm1, %v1560_v44 }
 0x5e8   :  { %1716 = vmatpush.bf16.msrb.mxu1 %v2084_v59 }
 0x5ec   :  { %1717 = vmatpush.bf16.msrb.mxu1 %v2083_v32 }
 0x5ee   :  { %1996 = vmatmul.msk.f32.gmra.mxu0 %vm1576_vm1, %v1561_v28 }
 0x5f0   :  { %1718 = vmatpush.bf16.msrb.mxu1 %v2082_v37 }
 0x5f4   :  { %1719 = vmatpush.bf16.msrb.mxu1 %v2081_v18 }
 0x5f6   :  { %1997 = vmatmul.msk.f32.gmra.mxu0 %vm1576_vm1, %v1562_v4 }
 0x5f8   :  { %1720 = vmatpush.bf16.msrb.mxu1 %v2080_v53 }
 0x5fc   :  { %1721 = vmatpush.bf16.msrb.mxu1 %v2079_v63 }
 0x5fe   :  { %1998 = vmatmul.msk.f32.gmra.mxu0 %vm1576_vm1, %v1563_v49 }
 0x606   :  { %1999 = vmatmul.msk.f32.gmra.mxu0 %vm1576_vm1, %v1564_v40 }
 0x60e   :  { %2000 = vmatmul.msk.f32.gmra.mxu0 %vm1576_vm1, %v1565_v36 }
 0x616   :  { %2001 = vmatmul.msk.f32.gmra.mxu0 %vm1576_vm1, %v1566_v43 }
 0x61e   :  { %2002 = vmatmul.msk.f32.gmra.mxu0 %vm1576_vm1, %v1567_v50 }
 0x663   :  { %v1618_v5 = vpop.f32.mrf.mxu0 }
 0x66b   :  { %v1621_v8 = vpop.f32.mrf.mxu0 }
 0x66c   :  { %v1642_v16 = vpack.c.bf16 %v1621_v8, %v1618_v5 }
 0x66e   :  { %1722 = vmatmul.bf16.vlgmr.msrb.gmra.mxu1 %v1642_v16 }
 0x673   :  { %v1624_v62 = vpop.f32.mrf.mxu0 }
 0x67b   :  { %v1627_v17 = vpop.f32.mrf.mxu0 }
 0x67c   :  { %v1643_v12 = vpack.c.bf16 %v1627_v17, %v1624_v62 }
 0x67e   :  { %1727 = vmatmul.bf16.gmra.mxu1 %v1643_v12 }
 0x683   :  { %v1630_v21 = vpop.f32.mrf.mxu0 }
 0x68b   :  { %v1633_v6 = vpop.f32.mrf.mxu0 }
 0x68c   :  { %v1644_v10 = vpack.c.bf16 %v1633_v6, %v1630_v21 }
 0x68e   :  { %1732 = vmatmul.bf16.gmra.mxu1 %v1644_v10 }
 0x693   :  { %v1636_v7 = vpop.f32.mrf.mxu0 }
 0x69b   :  { %v1639_v29 = vpop.f32.mrf.mxu0 }
 0x69c   :  { %v1645_v38 = vpack.c.bf16 %v1639_v29, %v1636_v7 }
 0x69e   :  { %1737 = vmatmul.bf16.gmra.mxu1 %v1645_v38 }
 0x6eb   :  { %v1723_v14 = vpop.f32.mrf.mxu1 }
 0x6ec   :  { %v1724_v0 = vadd.f32 %v2103_v34, %v1723_v14 }
 0x6ee   :  { %1743 = vst [vmem:[#allocation12] sm:$0xff] %v1724_v0 }
 0x6f3   :  { %v1725_v48 = vpop.f32.mrf.mxu1 }
 0x6f4   :  { %v1726_v52 = vadd.f32 %v2103_v34, %v1725_v48 }
 0x6f6   :  { %1744 = vst [vmem:[#allocation12 + $0x8] sm:$0xff] %v1726_v52 }
 0x6fb   :  { %v1728_v22 = vpop.f32.mrf.mxu1 }
 0x6fc   :  { %v1729_v15 = vadd.f32 %v2103_v34, %v1728_v22 }
 0x6fe   :  { %1745 = vst [vmem:[#allocation12 + $0x10] sm:$0xff] %v1729_v15 }
 0x703   :  { %v1730_v11 = vpop.f32.mrf.mxu1 }
 0x704   :  { %v1731_v33 = vadd.f32 %v2103_v34, %v1730_v11 }
 0x706   :  { %1746 = vst [vmem:[#allocation12 + $0x18] sm:$0xff] %v1731_v33 }
 0x70b   :  { %v1733_v46 = vpop.f32.mrf.mxu1 }
 0x70c   :  { %v1734_v51 = vadd.f32 %v2103_v34, %v1733_v46 }
 0x70e   :  { %1747 = vst [vmem:[#allocation12 + $0x20] sm:$0xff] %v1734_v51 }
 0x713   :  { %v1735_v2 = vpop.f32.mrf.mxu1 }
 0x714   :  { %v1736_v23 = vadd.f32 %v2103_v34, %v1735_v2 }
 0x716   :  { %1748 = vst [vmem:[#allocation12 + $0x28] sm:$0xff] %v1736_v23 }
 0x71b   :  { %v1738_v31 = vpop.f32.mrf.mxu1 }
 0x71c   :  { %v1739_v60 = vadd.f32 %v2103_v34, %v1738_v31 }
 0x71e   :  { %1749 = vst [vmem:[#allocation12 + $0x30] sm:$0xff] %v1739_v60 }
 0x723   :  { %v1740_v41 = vpop.f32.mrf.mxu1 }
 0x724   :  { %v1741_v42 = vadd.f32 %v2103_v34, %v1740_v41 }
 0x726   :  { %1750 = vst [vmem:[#allocation12 + $0x38] sm:$0xff] %v1741_v42 }
 0x727   :  { %1763 = dma.vmem_to_hbm [thread:$0]  %s1756_s10, 1024, %s1758_s13, [#allocation6], %s2368_s23, %s2368_s23, %s2369_s24  }
 0x728   :  { %2358 = dma.done.wait [#allocation6], 1024  }
 0x729   :  { %2359 = vsyncadd [#allocation6], 4294966272 }
 0x72a   :  { %1768 = vsyncpa [#allocation5], 1 }
 0x72b   :  { %1769 = vsyncpa [#allocation8], 1 }
 0x72c   :  { %1770 = vsyncpa [#allocation11], 1 }
 0x72d   :  { %1771 = vsyncpa [#allocation6], 1 }

</bundles_post_ra>
